<compile_context>
chip_gen: v7x
topology: tpu7x:2x2x1
jax: 0.10.0
libtpu: 0.0.40
codegen_flags: <defaults>
</compile_context>

<pallas_src>
import functools

import jax
import jax.numpy as jnp
from jax.experimental import pallas as pl
from jax.experimental.pallas import tpu as pltpu

NEG_INF = -1e30  # large negative additive mask (matches softmax(finfo.min) behavior)


def _layer_norm(x, w, b, eps):
    mu = jnp.mean(x, axis=-1, keepdims=True)
    xc = x - mu
    var = jnp.mean(xc * xc, axis=-1, keepdims=True)
    return xc * jax.lax.rsqrt(var + eps) * w + b


def _encoder_kernel(x_ref, kb_ref,
                    ln1w_ref, ln1b_ref,
                    wq_ref, bq_ref, wk_ref, bk_ref, wv_ref, bv_ref,
                    wo_ref, bo_ref,
                    ln2w_ref, ln2b_ref,
                    w1_ref, b1_ref, w2_ref, b2_ref,
                    flnw_ref, flnb_ref,
                    out_ref, h_sc,
                    *, num_heads, head_dim, block_b, t_pad, embed_dim, eps):
    layer = pl.program_id(1)
    n_layers = pl.num_programs(1)
    H, Dh, E, T = num_heads, head_dim, embed_dim, t_pad
    BB = block_b
    M = BB * T

    # First layer for this batch block: load embeddings into the resident stream.
    @pl.when(layer == 0)
    def _():
        h_sc[...] = x_ref[...].reshape(M, E)

    hid = h_sc[...]                                           # (M, E) f32 residual

    # ---- LN1 + q/k/v projections on the full (M, E) slab (bf16 MXU, f32 acc) ----
    xb = _layer_norm(hid, ln1w_ref[0], ln1b_ref[0], eps).astype(jnp.bfloat16)
    # softmax scale is pre-folded into wq / bq by the wrapper.
    q2 = (jnp.dot(xb, wq_ref[0], preferred_element_type=jnp.float32)
          + bq_ref[0]).astype(jnp.bfloat16)
    k2 = (jnp.dot(xb, wk_ref[0], preferred_element_type=jnp.float32)
          + bk_ref[0]).astype(jnp.bfloat16)
    v2 = (jnp.dot(xb, wv_ref[0], preferred_element_type=jnp.float32)
          + bv_ref[0]).astype(jnp.bfloat16)

    # ---- additive mask: causal + padded-key / user attention_mask bias ----
    row = jax.lax.broadcasted_iota(jnp.int32, (T, T), 0)
    col = jax.lax.broadcasted_iota(jnp.int32, (T, T), 1)
    causal = jnp.where(col <= row, 0.0, NEG_INF).astype(jnp.float32)
    mask = causal[None, :, :] + kb_ref[...]                   # (BB, T, T)

    # ---- head-major relayout: once per layer, hoisted out of any per-batch loop ----
    def split_heads(t2):                                      # (M, E) -> (H*BB, T, Dh)
        t3 = t2.reshape(BB, T, E)
        return jnp.stack([t3[:, :, h * Dh:(h + 1) * Dh] for h in range(H)],
                         axis=0).reshape(H * BB, T, Dh)

    qh, kh, vh = split_heads(q2), split_heads(k2), split_heads(v2)

    # ---- attention: single batched matmul over all (head, batch) pairs ----
    s = jnp.einsum('nqd,nkd->nqk', qh, kh,
                   preferred_element_type=jnp.float32)        # (H*BB, T, T) f32
    s = s.reshape(H, BB, T, T) + mask[None]
    s = s - jnp.max(s, axis=-1, keepdims=True)                # stable softmax (f32)
    p = jnp.exp(s)
    p = p * pl.reciprocal(jnp.sum(p, axis=-1, keepdims=True), approx=True)
    # TODO(synk): attention dropout skipped (inference / training=False path).
    p = p.reshape(H * BB, T, T).astype(jnp.bfloat16)

    o = jnp.einsum('nqk,nkd->nqd', p, vh,
                   preferred_element_type=jnp.float32)        # (H*BB, T, Dh)
    o = o.astype(jnp.bfloat16).reshape(H, BB, T, Dh)
    # One head-concat back to (M, E), then a single K=E output projection.
    o2 = jnp.concatenate([o[h].reshape(M, Dh) for h in range(H)], axis=-1)
    y = jnp.dot(o2, wo_ref[0], preferred_element_type=jnp.float32) + bo_ref[0]

    h1 = hid + y                                              # attention residual

    # ---- LN2 + MLP (quick_gelu) on the full (M, E) slab ----
    xb2 = _layer_norm(h1, ln2w_ref[0], ln2b_ref[0], eps).astype(jnp.bfloat16)
    f = jnp.dot(xb2, w1_ref[0], preferred_element_type=jnp.float32) + b1_ref[0]
    f = f * jax.nn.sigmoid(1.702 * f)                         # quick_gelu (EUP sigmoid)
    f = jnp.dot(f.astype(jnp.bfloat16), w2_ref[0],
                preferred_element_type=jnp.float32) + b2_ref[0]
    h2 = h1 + f
    h_sc[...] = h2                                            # carry to next layer

    # Last layer: final LayerNorm, bf16 lane-dense store of the whole block.
    @pl.when(layer == n_layers - 1)
    def _():
        yf = _layer_norm(h2, flnw_ref[0], flnb_ref[0], eps)
        out_ref[...] = yf.reshape(BB, T, E).astype(out_ref.dtype)


def _round_up(x, m):
    return ((x + m - 1) // m) * m


def _vmem_cap_bytes():
    try:
        info = pltpu.get_tpu_info()
        cap = getattr(info, "vmem_capacity_bytes", None)
        if cap:
            return int(cap)
    except Exception:
        pass
    return 64 * 1024 * 1024          # conservative fallback (v7x per-core VMEM)


def _estimate_vmem_bytes(bb, t_pad, E, inter, H):
    M = bb * t_pad
    act = M * E * 4                         # resident f32 residual scratch
    act += 2 * bb * t_pad * E * 4           # embedding block (double buffered, f32)
    act += 2 * bb * t_pad * E * 2           # bf16 output block (double buffered)
    act += 2 * bb * t_pad * 4               # key-bias block
    tmp = 3 * M * E * (4 + 2)               # q/k/v f32 accum + bf16 casts
    tmp += 3 * M * E * 2                    # head-major bf16 copies
    tmp += 2 * H * bb * t_pad * t_pad * 4   # scores + probs
    tmp += M * E * 4                        # attn out / residual temporaries
    tmp += M * inter * 4 + M * inter * 2    # MLP hidden
    w = 2 * ((4 * E * E + 2 * E * inter) * 2 + (8 * E + inter) * 4)  # dbl-buf weights
    return act + tmp + w


def clipseg_text_transformer(input_ids, params, *, num_heads, num_layers,
                             eos_token_id=2, attention_mask=None,
                             layer_norm_eps=1e-5, block_b=None,
                             out_dtype=jnp.bfloat16):
    """Returns (last_hidden_state, pooled_output) like CLIPSegTextTransformer."""
    B, T = input_ids.shape
    E = params['tok_emb'].shape[1]
    inter = params['fc1_w'].shape[-1]
    H, L = num_heads, num_layers
    Dh = E // H
    assert Dh * H == E
    scale = Dh ** (-0.5)

    # --- embeddings (token + position lookup; gathers done in plain JAX) ---
    x = params['tok_emb'][input_ids] + params['pos_emb'][jnp.arange(T)][None, :, :]
    x = x.astype(jnp.float32)

    # --- pad sequence to a sublane-aligned length (multiple of 8 is enough) ---
    t_pad = max(8, _round_up(T, 8))
    if t_pad != T:
        x = jnp.pad(x, ((0, 0), (0, t_pad - T), (0, 0)))

    # additive key bias: masks padded key positions and optional attention_mask==0.
    valid = jnp.broadcast_to(jnp.arange(t_pad)[None, :] < T, (B, t_pad))
    if attention_mask is not None:
        am = jnp.pad(attention_mask.astype(jnp.int32), ((0, 0), (0, t_pad - T)))
        valid = valid & (am > 0)
    key_bias = jnp.where(valid, 0.0, NEG_INF).astype(jnp.float32)[:, None, :]  # (B,1,Tp)

    # Pack as much batch as fits per grid step so the weight stream is amortized.
    vmem_cap = _vmem_cap_bytes()
    budget = int(vmem_cap * 0.8)
    if block_b is None:
        block_b = B
        while (block_b > 1 and block_b % 2 == 0 and
               _estimate_vmem_bytes(block_b, t_pad, E, inter, H) > budget):
            block_b //= 2
    assert B % block_b == 0
    est = _estimate_vmem_bytes(block_b, t_pad, E, inter, H)
    vmem_limit = int(min(budget, max(48 * 1024 * 1024, 2 * est)))

    # --- weight preprocessing: bf16 matmul operands, scale folded into q_proj ---
    b16 = lambda w: w.astype(jnp.bfloat16)
    f32 = lambda w: w.astype(jnp.float32)
    wq = b16(params['wq'] * scale)
    bq = f32(params['bq'] * scale).reshape(L, 1, E)
    wk, wv, wo = b16(params['wk']), b16(params['wv']), b16(params['wo'])
    bk = f32(params['bk']).reshape(L, 1, E)
    bv = f32(params['bv']).reshape(L, 1, E)
    bo = f32(params['bo']).reshape(L, 1, E)
    w1 = b16(params['fc1_w']); b1 = f32(params['fc1_b']).reshape(L, 1, inter)
    w2 = b16(params['fc2_w']); b2 = f32(params['fc2_b']).reshape(L, 1, E)
    ln1w = f32(params['ln1_w']).reshape(L, 1, E); ln1b = f32(params['ln1_b']).reshape(L, 1, E)
    ln2w = f32(params['ln2_w']).reshape(L, 1, E); ln2b = f32(params['ln2_b']).reshape(L, 1, E)
    flnw = f32(params['final_ln_w']).reshape(1, 1, E)
    flnb = f32(params['final_ln_b']).reshape(1, 1, E)

    kernel = functools.partial(
        _encoder_kernel, num_heads=H, head_dim=Dh, block_b=block_b,
        t_pad=t_pad, embed_dim=E, eps=layer_norm_eps)

    per_layer_mat = lambda r, c: pl.BlockSpec((1, r, c), lambda g, l: (l, 0, 0))
    per_layer_vec = lambda n: pl.BlockSpec((1, 1, n), lambda g, l: (l, 0, 0))
    const_vec = pl.BlockSpec((1, 1, E), lambda g, l: (0, 0, 0))
    x_spec = pl.BlockSpec((block_b, t_pad, E), lambda g, l: (g, 0, 0))
    out_spec = pl.BlockSpec((block_b, t_pad, E), lambda g, l: (g, 0, 0))
    kb_spec = pl.BlockSpec((block_b, 1, t_pad), lambda g, l: (g, 0, 0))

    in_specs = [x_spec, kb_spec,
                per_layer_vec(E), per_layer_vec(E),              # ln1
                per_layer_mat(E, E), per_layer_vec(E),           # q_proj
                per_layer_mat(E, E), per_layer_vec(E),           # k_proj
                per_layer_mat(E, E), per_layer_vec(E),           # v_proj
                per_layer_mat(E, E), per_layer_vec(E),           # out_proj
                per_layer_vec(E), per_layer_vec(E),              # ln2
                per_layer_mat(E, inter), per_layer_vec(inter),   # fc1
                per_layer_mat(inter, E), per_layer_vec(E),       # fc2
                const_vec, const_vec]                            # final layer norm

    out = pl.pallas_call(
        kernel,
        out_shape=jax.ShapeDtypeStruct((B, t_pad, E), out_dtype),
        grid_spec=pltpu.PrefetchScalarGridSpec(
            num_scalar_prefetch=0,
            grid=(B // block_b, L),
            in_specs=in_specs,
            out_specs=out_spec,
            scratch_shapes=[pltpu.VMEM((block_b * t_pad, E), jnp.float32)]),
        compiler_params=pltpu.CompilerParams(
            dimension_semantics=("parallel", "arbitrary"),
            vmem_limit_bytes=vmem_limit),
    )(x, key_bias,
      ln1w, ln1b, wq, bq, wk, bk, wv, bv, wo, bo,
      ln2w, ln2b, w1, b1, w2, b2, flnw, flnb)

    last_hidden = out[:, :T, :]

    # --- EOS pooling (argmax + gather done in plain JAX) ---
    ids = input_ids.astype(jnp.int32)
    if eos_token_id == 2:
        idx = jnp.argmax(ids, axis=-1)
    else:
        idx = jnp.argmax((ids == eos_token_id).astype(jnp.int32), axis=-1)
    pooled = last_hidden[jnp.arange(B), idx].astype(jnp.float32)
    return last_hidden, pooled


# ---------------------------------------------------------------------------
# Pure-JAX reference mirroring the PyTorch module (same bf16/f32 mixed precision).
# ---------------------------------------------------------------------------
def _mm_ref(x, w, b):
    return jnp.dot(x.astype(jnp.bfloat16), w.astype(jnp.bfloat16),
                   preferred_element_type=jnp.float32) + b


def clipseg_text_ref(input_ids, attention_mask, params, *, num_heads, num_layers,
                     eos_token_id=2, layer_norm_eps=1e-5):
    B, T = input_ids.shape
    E = params['tok_emb'].shape[1]
    H, L = num_heads, num_layers
    D = E // H
    scale = D ** (-0.5)
    eps = layer_norm_eps

    h = (params['tok_emb'][input_ids] +
         params['pos_emb'][jnp.arange(T)][None, :, :]).astype(jnp.float32)

    causal = jnp.where(jnp.arange(T)[None, :] <= jnp.arange(T)[:, None], 0.0, NEG_INF)
    mask = causal[None, None, :, :]
    if attention_mask is not None:
        mask = mask + jnp.where(attention_mask > 0, 0.0, NEG_INF)[:, None, None, :]

    for l in range(L):
        res = h
        hn = _layer_norm(h, params['ln1_w'][l], params['ln1_b'][l], eps)
        q = _mm_ref(hn, params['wq'][l], params['bq'][l]) * scale
        k = _mm_ref(hn, params['wk'][l], params['bk'][l])
        v = _mm_ref(hn, params['wv'][l], params['bv'][l])
        q = q.reshape(B, T, H, D).transpose(0, 2, 1, 3)
        k = k.reshape(B, T, H, D).transpose(0, 2, 1, 3)
        v = v.reshape(B, T, H, D).transpose(0, 2, 1, 3)
        s = jnp.einsum('bhqd,bhkd->bhqk', q.astype(jnp.bfloat16), k.astype(jnp.bfloat16),
                       preferred_element_type=jnp.float32) + mask
        p = jax.nn.softmax(s, axis=-1)
        o = jnp.einsum('bhqk,bhkd->bhqd', p.astype(jnp.bfloat16), v.astype(jnp.bfloat16),
                       preferred_element_type=jnp.float32)
        o = o.transpose(0, 2, 1, 3).reshape(B, T, E)
        h = res + _mm_ref(o, params['wo'][l], params['bo'][l])

        res = h
        hn = _layer_norm(h, params['ln2_w'][l], params['ln2_b'][l], eps)
        f = _mm_ref(hn, params['fc1_w'][l], params['fc1_b'][l])
        f = f * jax.nn.sigmoid(1.702 * f)
        h = res + _mm_ref(f, params['fc2_w'][l], params['fc2_b'][l])

    h = _layer_norm(h, params['final_ln_w'], params['final_ln_b'], eps)
    ids = input_ids.astype(jnp.int32)
    if eos_token_id == 2:
        idx = jnp.argmax(ids, axis=-1)
    else:
        idx = jnp.argmax((ids == eos_token_id).astype(jnp.int32), axis=-1)
    pooled = h[jnp.arange(B), idx]
    return h, pooled


def init_params(key, *, vocab_size, max_pos, hidden, intermediate, layers):
    E, inter, L = hidden, intermediate, layers
    ks = jax.random.split(key, 20)
    n = lambda k, shape, s=0.02: jax.random.normal(k, shape, jnp.float32) * s
    # Linear weights stored pre-transposed as (in, out): y = x @ W + b.
    return {
        'tok_emb': n(ks[0], (vocab_size, E)),
        'pos_emb': n(ks[1], (max_pos, E)),
        'ln1_w': 1.0 + n(ks[2], (L, E)), 'ln1_b': n(ks[3], (L, E)),
        'wq': n(ks[4], (L, E, E)), 'bq': n(ks[5], (L, E)),
        'wk': n(ks[6], (L, E, E)), 'bk': n(ks[7], (L, E)),
        'wv': n(ks[8], (L, E, E)), 'bv': n(ks[9], (L, E)),
        'wo': n(ks[10], (L, E, E)), 'bo': n(ks[11], (L, E)),
        'ln2_w': 1.0 + n(ks[12], (L, E)), 'ln2_b': n(ks[13], (L, E)),
        'fc1_w': n(ks[14], (L, E, inter)), 'fc1_b': n(ks[15], (L, inter)),
        'fc2_w': n(ks[16], (L, inter, E)), 'fc2_b': n(ks[17], (L, E)),
        'final_ln_w': 1.0 + n(ks[18], (E,)), 'final_ln_b': n(ks[19], (E,)),
    }


if __name__ == "__main__":
    # Small CLIPSeg-text-like config: hidden=32, heads=4, intermediate=64, 2 layers.
    B, T, E, H, INTER, L = 4, 8, 32, 4, 64, 2
    VOCAB, MAX_POS = 64, 16
    EOS = 2

    key = jax.random.PRNGKey(0)
    k_ids, k_p = jax.random.split(key)
    input_ids = jax.random.randint(k_ids, (B, T), 3, VOCAB)
    params = init_params(k_p, vocab_size=VOCAB, max_pos=MAX_POS,
                         hidden=E, intermediate=INTER, layers=L)

    last_hidden, pooled = clipseg_text_transformer(
        input_ids, params, num_heads=H, num_layers=L, eos_token_id=EOS)
    last_hidden = jax.block_until_ready(last_hidden)
    pooled = jax.block_until_ready(pooled)

    ref_h, ref_p = clipseg_text_ref(
        input_ids, None, params, num_heads=H, num_layers=L, eos_token_id=EOS)

    assert last_hidden.shape == (B, T, E) and pooled.shape == (B, E)
    lh = last_hidden.astype(jnp.float32)
    dh = float(jnp.max(jnp.abs(lh - ref_h)))
    dp = float(jnp.max(jnp.abs(pooled - ref_p)))
    # tolerance covers bf16 output storage + approx softmax reciprocal.
    assert jnp.allclose(lh, ref_h, atol=3e-2, rtol=3e-2), f"hidden mismatch {dh}"
    assert jnp.allclose(pooled, ref_p, atol=3e-2, rtol=3e-2), f"pooled mismatch {dp}"

    print("KERNEL_OK")
</pallas_src>

<mosaic_0001>
module attributes {stable_mosaic.version = 11 : i64} {
  func.func @_encoder_kernel(%arg0: i32, %arg1: i32, %arg2: memref<4x8x32xf32, #tpu.memory_space<vmem>>, %arg3: memref<4x1x8xf32, #tpu.memory_space<vmem>>, %arg4: memref<1x1x32xf32, #tpu.memory_space<vmem>>, %arg5: memref<1x1x32xf32, #tpu.memory_space<vmem>>, %arg6: memref<1x32x32xbf16, #tpu.memory_space<vmem>>, %arg7: memref<1x1x32xf32, #tpu.memory_space<vmem>>, %arg8: memref<1x32x32xbf16, #tpu.memory_space<vmem>>, %arg9: memref<1x1x32xf32, #tpu.memory_space<vmem>>, %arg10: memref<1x32x32xbf16, #tpu.memory_space<vmem>>, %arg11: memref<1x1x32xf32, #tpu.memory_space<vmem>>, %arg12: memref<1x32x32xbf16, #tpu.memory_space<vmem>>, %arg13: memref<1x1x32xf32, #tpu.memory_space<vmem>>, %arg14: memref<1x1x32xf32, #tpu.memory_space<vmem>>, %arg15: memref<1x1x32xf32, #tpu.memory_space<vmem>>, %arg16: memref<1x32x64xbf16, #tpu.memory_space<vmem>>, %arg17: memref<1x1x64xf32, #tpu.memory_space<vmem>>, %arg18: memref<1x64x32xbf16, #tpu.memory_space<vmem>>, %arg19: memref<1x1x32xf32, #tpu.memory_space<vmem>>, %arg20: memref<1x1x32xf32, #tpu.memory_space<vmem>>, %arg21: memref<1x1x32xf32, #tpu.memory_space<vmem>>, %arg22: memref<4x8x32xbf16, #tpu.memory_space<vmem>>, %arg23: memref<32x32xf32, #tpu.memory_space<vmem>>) attributes {dimension_semantics = [#tpu.dimension_semantics<parallel>, #tpu.dimension_semantics<arbitrary>], iteration_bounds = array<i64: 1, 2>, scalar_prefetch = 0 : i64, scratch_operands = 1 : i64, tpu.core_type = #tpu.core_type<tc>, window_params = [{transform_indices = @transform_0, window_bounds = array<i64: 4, 8, 32>}, {transform_indices = @transform_1, window_bounds = array<i64: 4, 1, 8>}, {transform_indices = @transform_2, window_bounds = array<i64: 1, 1, 32>}, {transform_indices = @transform_3, window_bounds = array<i64: 1, 1, 32>}, {transform_indices = @transform_4, window_bounds = array<i64: 1, 32, 32>}, {transform_indices = @transform_5, window_bounds = array<i64: 1, 1, 32>}, {transform_indices = @transform_6, window_bounds = array<i64: 1, 32, 32>}, {transform_indices = @transform_7, window_bounds = array<i64: 1, 1, 32>}, {transform_indices = @transform_8, window_bounds = array<i64: 1, 32, 32>}, {transform_indices = @transform_9, window_bounds = array<i64: 1, 1, 32>}, {transform_indices = @transform_10, window_bounds = array<i64: 1, 32, 32>}, {transform_indices = @transform_11, window_bounds = array<i64: 1, 1, 32>}, {transform_indices = @transform_12, window_bounds = array<i64: 1, 1, 32>}, {transform_indices = @transform_13, window_bounds = array<i64: 1, 1, 32>}, {transform_indices = @transform_14, window_bounds = array<i64: 1, 32, 64>}, {transform_indices = @transform_15, window_bounds = array<i64: 1, 1, 64>}, {transform_indices = @transform_16, window_bounds = array<i64: 1, 64, 32>}, {transform_indices = @transform_17, window_bounds = array<i64: 1, 1, 32>}, {pipeline_mode = #tpu.pipeline_mode<synchronous>, transform_indices = @transform_18, window_bounds = array<i64: 1, 1, 32>}, {pipeline_mode = #tpu.pipeline_mode<synchronous>, transform_indices = @transform_19, window_bounds = array<i64: 1, 1, 32>}, {transform_indices = @transform_20, window_bounds = array<i64: 4, 8, 32>}]} {
    %c0_i32 = arith.constant 0 : i32
    %0 = arith.cmpi eq, %arg1, %c0_i32 : i32
    %1 = arith.extui %0 : i1 to i32
    %c0_i32_0 = arith.constant 0 : i32
    %2 = arith.cmpi ne, %1, %c0_i32_0 : i32
    scf.if %2 {
      %c0_79 = arith.constant 0 : index
      %c0_80 = arith.constant 0 : index
      %c0_81 = arith.constant 0 : index
      %191 = vector.load %arg2[%c0_79, %c0_80, %c0_81] : memref<4x8x32xf32, #tpu.memory_space<vmem>>, vector<4x8x32xf32>
      %192 = vector.shape_cast %191 : vector<4x8x32xf32> to vector<32x32xf32>
      %c0_82 = arith.constant 0 : index
      %c0_83 = arith.constant 0 : index
      %193 = vector.load %arg23[%c0_82, %c0_83] : memref<32x32xf32, #tpu.memory_space<vmem>>, vector<32x32xf32>
      tpu.vector_store %arg23[%c0_82, %c0_83], %192 {strides = array<i32>} : memref<32x32xf32, #tpu.memory_space<vmem>>, vector<32x32xf32>,
    } else {
    }
    %c0 = arith.constant 0 : index
    %c0_1 = arith.constant 0 : index
    %3 = vector.load %arg23[%c0, %c0_1] : memref<32x32xf32, #tpu.memory_space<vmem>>, vector<32x32xf32>
    %c0_2 = arith.constant 0 : index
    %c0_3 = arith.constant 0 : index
    %c0_4 = arith.constant 0 : index
    %4 = vector.load %arg4[%c0_2, %c0_3, %c0_4] : memref<1x1x32xf32, #tpu.memory_space<vmem>>, vector<1x1x32xf32>
    %5 = vector.shape_cast %4 : vector<1x1x32xf32> to vector<1x32xf32>
    %c0_5 = arith.constant 0 : index
    %c0_6 = arith.constant 0 : index
    %c0_7 = arith.constant 0 : index
    %6 = vector.load %arg5[%c0_5, %c0_6, %c0_7] : memref<1x1x32xf32, #tpu.memory_space<vmem>>, vector<1x1x32xf32>
    %7 = vector.shape_cast %6 : vector<1x1x32xf32> to vector<1x32xf32>
    %cst = arith.constant dense<0.000000e+00> : vector<32xf32>
    %8 = vector.multi_reduction <add>, %3, %cst [1] : vector<32x32xf32> to vector<32xf32>
    %9 = vector.shape_cast %8 : vector<32xf32> to vector<32x1xf32>
    %cst_8 = arith.constant 3.200000e+01 : f32
    %10 = vector.broadcast %cst_8 : f32 to vector<32x1xf32>
    %11 = arith.divf %9, %10 : vector<32x1xf32>
    %12 = vector.broadcast %11 : vector<32x1xf32> to vector<32x32xf32>
    %13 = arith.subf %3, %12 : vector<32x32xf32>
    %14 = arith.mulf %13, %13 : vector<32x32xf32>
    %cst_9 = arith.constant dense<0.000000e+00> : vector<32xf32>
    %15 = vector.multi_reduction <add>, %14, %cst_9 [1] : vector<32x32xf32> to vector<32xf32>
    %16 = vector.shape_cast %15 : vector<32xf32> to vector<32x1xf32>
    %cst_10 = arith.constant 3.200000e+01 : f32
    %17 = vector.broadcast %cst_10 : f32 to vector<32x1xf32>
    %18 = arith.divf %16, %17 : vector<32x1xf32>
    %cst_11 = arith.constant 9.99999974E-6 : f32
    %19 = vector.broadcast %cst_11 : f32 to vector<32x1xf32>
    %20 = arith.addf %18, %19 : vector<32x1xf32>
    %21 = math.rsqrt %20 : vector<32x1xf32>
    %22 = vector.broadcast %21 : vector<32x1xf32> to vector<32x32xf32>
    %23 = arith.mulf %13, %22 : vector<32x32xf32>
    %24 = vector.broadcast %5 : vector<1x32xf32> to vector<32x32xf32>
    %25 = arith.mulf %23, %24 : vector<32x32xf32>
    %26 = vector.broadcast %7 : vector<1x32xf32> to vector<32x32xf32>
    %27 = arith.addf %25, %26 : vector<32x32xf32>
    %28 = arith.truncf %27 : vector<32x32xf32> to vector<32x32xbf16>
    %c0_12 = arith.constant 0 : index
    %c0_13 = arith.constant 0 : index
    %c0_14 = arith.constant 0 : index
    %29 = vector.load %arg6[%c0_12, %c0_13, %c0_14] : memref<1x32x32xbf16, #tpu.memory_space<vmem>>, vector<1x32x32xbf16>
    %30 = vector.shape_cast %29 : vector<1x32x32xbf16> to vector<32x32xbf16>
    %cst_15 = arith.constant dense<0.000000e+00> : vector<32x32xf32>
    %31 = tpu.matmul %28, %30, %cst_15 {dimension_numbers = #tpu.dot_dimension_numbers<[1], [0], [0], [1], [0, 0, 1, 1], [], []>} : vector<32x32xbf16>, vector<32x32xbf16>, vector<32x32xf32> -> vector<32x32xf32>
    %c0_16 = arith.constant 0 : index
    %c0_17 = arith.constant 0 : index
    %c0_18 = arith.constant 0 : index
    %32 = vector.load %arg7[%c0_16, %c0_17, %c0_18] : memref<1x1x32xf32, #tpu.memory_space<vmem>>, vector<1x1x32xf32>
    %33 = vector.shape_cast %32 : vector<1x1x32xf32> to vector<1x32xf32>
    %34 = vector.broadcast %33 : vector<1x32xf32> to vector<32x32xf32>
    %35 = arith.addf %31, %34 : vector<32x32xf32>
    %36 = arith.truncf %35 : vector<32x32xf32> to vector<32x32xbf16>
    %c0_19 = arith.constant 0 : index
    %c0_20 = arith.constant 0 : index
    %c0_21 = arith.constant 0 : index
    %37 = vector.load %arg8[%c0_19, %c0_20, %c0_21] : memref<1x32x32xbf16, #tpu.memory_space<vmem>>, vector<1x32x32xbf16>
    %38 = vector.shape_cast %37 : vector<1x32x32xbf16> to vector<32x32xbf16>
    %cst_22 = arith.constant dense<0.000000e+00> : vector<32x32xf32>
    %39 = tpu.matmul %28, %38, %cst_22 {dimension_numbers = #tpu.dot_dimension_numbers<[1], [0], [0], [1], [0, 0, 1, 1], [], []>} : vector<32x32xbf16>, vector<32x32xbf16>, vector<32x32xf32> -> vector<32x32xf32>
    %c0_23 = arith.constant 0 : index
    %c0_24 = arith.constant 0 : index
    %c0_25 = arith.constant 0 : index
    %40 = vector.load %arg9[%c0_23, %c0_24, %c0_25] : memref<1x1x32xf32, #tpu.memory_space<vmem>>, vector<1x1x32xf32>
    %41 = vector.shape_cast %40 : vector<1x1x32xf32> to vector<1x32xf32>
    %42 = vector.broadcast %41 : vector<1x32xf32> to vector<32x32xf32>
    %43 = arith.addf %39, %42 : vector<32x32xf32>
    %44 = arith.truncf %43 : vector<32x32xf32> to vector<32x32xbf16>
    %c0_26 = arith.constant 0 : index
    %c0_27 = arith.constant 0 : index
    %c0_28 = arith.constant 0 : index
    %45 = vector.load %arg10[%c0_26, %c0_27, %c0_28] : memref<1x32x32xbf16, #tpu.memory_space<vmem>>, vector<1x32x32xbf16>
    %46 = vector.shape_cast %45 : vector<1x32x32xbf16> to vector<32x32xbf16>
    %cst_29 = arith.constant dense<0.000000e+00> : vector<32x32xf32>
    %47 = tpu.matmul %28, %46, %cst_29 {dimension_numbers = #tpu.dot_dimension_numbers<[1], [0], [0], [1], [0, 0, 1, 1], [], []>} : vector<32x32xbf16>, vector<32x32xbf16>, vector<32x32xf32> -> vector<32x32xf32>
    %c0_30 = arith.constant 0 : index
    %c0_31 = arith.constant 0 : index
    %c0_32 = arith.constant 0 : index
    %48 = vector.load %arg11[%c0_30, %c0_31, %c0_32] : memref<1x1x32xf32, #tpu.memory_space<vmem>>, vector<1x1x32xf32>
    %49 = vector.shape_cast %48 : vector<1x1x32xf32> to vector<1x32xf32>
    %50 = vector.broadcast %49 : vector<1x32xf32> to vector<32x32xf32>
    %51 = arith.addf %47, %50 : vector<32x32xf32>
    %52 = arith.truncf %51 : vector<32x32xf32> to vector<32x32xbf16>
    %53 = tpu.iota {dimensions = array<i32: 0>} : vector<8x8xi32>
    %54 = tpu.iota {dimensions = array<i32: 1>} : vector<8x8xi32>
    %55 = arith.cmpi sle, %54, %53 : vector<8x8xi32>
    %cst_33 = arith.constant 0.000000e+00 : f32
    %cst_34 = arith.constant -1.000000e+30 : f32
    %56 = vector.broadcast %cst_33 : f32 to vector<8x8xf32>
    %57 = vector.broadcast %cst_34 : f32 to vector<8x8xf32>
    %58 = arith.select %55, %56, %57 : vector<8x8xi1>, vector<8x8xf32>
    %59 = vector.shape_cast %58 : vector<8x8xf32> to vector<1x8x8xf32>
    %c0_35 = arith.constant 0 : index
    %c0_36 = arith.constant 0 : index
    %c0_37 = arith.constant 0 : index
    %60 = vector.load %arg3[%c0_35, %c0_36, %c0_37] : memref<4x1x8xf32, #tpu.memory_space<vmem>>, vector<4x1x8xf32>
    %61 = vector.broadcast %59 : vector<1x8x8xf32> to vector<4x8x8xf32>
    %62 = vector.broadcast %60 : vector<4x1x8xf32> to vector<4x8x8xf32>
    %63 = arith.addf %61, %62 : vector<4x8x8xf32>
    %64 = vector.shape_cast %36 : vector<32x32xbf16> to vector<4x8x32xbf16>
    %65 = vector.extract_strided_slice %64 {offsets = [0, 0, 0], sizes = [4, 8, 8], strides = [1, 1, 1]} : vector<4x8x32xbf16> to vector<4x8x8xbf16>
    %66 = vector.extract_strided_slice %64 {offsets = [0, 0, 8], sizes = [4, 8, 8], strides = [1, 1, 1]} : vector<4x8x32xbf16> to vector<4x8x8xbf16>
    %67 = vector.extract_strided_slice %64 {offsets = [0, 0, 16], sizes = [4, 8, 8], strides = [1, 1, 1]} : vector<4x8x32xbf16> to vector<4x8x8xbf16>
    %68 = vector.extract_strided_slice %64 {offsets = [0, 0, 24], sizes = [4, 8, 8], strides = [1, 1, 1]} : vector<4x8x32xbf16> to vector<4x8x8xbf16>
    %69 = vector.shape_cast %65 : vector<4x8x8xbf16> to vector<1x4x8x8xbf16>
    %70 = vector.shape_cast %66 : vector<4x8x8xbf16> to vector<1x4x8x8xbf16>
    %71 = vector.shape_cast %67 : vector<4x8x8xbf16> to vector<1x4x8x8xbf16>
    %72 = vector.shape_cast %68 : vector<4x8x8xbf16> to vector<1x4x8x8xbf16>
    %73 = tpu.concatenate %69, %70, %71, %72 in 0 : vector<1x4x8x8xbf16>, vector<1x4x8x8xbf16>, vector<1x4x8x8xbf16>, vector<1x4x8x8xbf16> -> vector<4x4x8x8xbf16>
    %74 = vector.shape_cast %73 : vector<4x4x8x8xbf16> to vector<16x8x8xbf16>
    %75 = vector.shape_cast %44 : vector<32x32xbf16> to vector<4x8x32xbf16>
    %76 = vector.extract_strided_slice %75 {offsets = [0, 0, 0], sizes = [4, 8, 8], strides = [1, 1, 1]} : vector<4x8x32xbf16> to vector<4x8x8xbf16>
    %77 = vector.extract_strided_slice %75 {offsets = [0, 0, 8], sizes = [4, 8, 8], strides = [1, 1, 1]} : vector<4x8x32xbf16> to vector<4x8x8xbf16>
    %78 = vector.extract_strided_slice %75 {offsets = [0, 0, 16], sizes = [4, 8, 8], strides = [1, 1, 1]} : vector<4x8x32xbf16> to vector<4x8x8xbf16>
    %79 = vector.extract_strided_slice %75 {offsets = [0, 0, 24], sizes = [4, 8, 8], strides = [1, 1, 1]} : vector<4x8x32xbf16> to vector<4x8x8xbf16>
    %80 = vector.shape_cast %76 : vector<4x8x8xbf16> to vector<1x4x8x8xbf16>
    %81 = vector.shape_cast %77 : vector<4x8x8xbf16> to vector<1x4x8x8xbf16>
    %82 = vector.shape_cast %78 : vector<4x8x8xbf16> to vector<1x4x8x8xbf16>
    %83 = vector.shape_cast %79 : vector<4x8x8xbf16> to vector<1x4x8x8xbf16>
    %84 = tpu.concatenate %80, %81, %82, %83 in 0 : vector<1x4x8x8xbf16>, vector<1x4x8x8xbf16>, vector<1x4x8x8xbf16>, vector<1x4x8x8xbf16> -> vector<4x4x8x8xbf16>
    %85 = vector.shape_cast %84 : vector<4x4x8x8xbf16> to vector<16x8x8xbf16>
    %86 = vector.shape_cast %52 : vector<32x32xbf16> to vector<4x8x32xbf16>
    %87 = vector.extract_strided_slice %86 {offsets = [0, 0, 0], sizes = [4, 8, 8], strides = [1, 1, 1]} : vector<4x8x32xbf16> to vector<4x8x8xbf16>
    %88 = vector.extract_strided_slice %86 {offsets = [0, 0, 8], sizes = [4, 8, 8], strides = [1, 1, 1]} : vector<4x8x32xbf16> to vector<4x8x8xbf16>
    %89 = vector.extract_strided_slice %86 {offsets = [0, 0, 16], sizes = [4, 8, 8], strides = [1, 1, 1]} : vector<4x8x32xbf16> to vector<4x8x8xbf16>
    %90 = vector.extract_strided_slice %86 {offsets = [0, 0, 24], sizes = [4, 8, 8], strides = [1, 1, 1]} : vector<4x8x32xbf16> to vector<4x8x8xbf16>
    %91 = vector.shape_cast %87 : vector<4x8x8xbf16> to vector<1x4x8x8xbf16>
    %92 = vector.shape_cast %88 : vector<4x8x8xbf16> to vector<1x4x8x8xbf16>
    %93 = vector.shape_cast %89 : vector<4x8x8xbf16> to vector<1x4x8x8xbf16>
    %94 = vector.shape_cast %90 : vector<4x8x8xbf16> to vector<1x4x8x8xbf16>
    %95 = tpu.concatenate %91, %92, %93, %94 in 0 : vector<1x4x8x8xbf16>, vector<1x4x8x8xbf16>, vector<1x4x8x8xbf16>, vector<1x4x8x8xbf16> -> vector<4x4x8x8xbf16>
    %96 = vector.shape_cast %95 : vector<4x4x8x8xbf16> to vector<16x8x8xbf16>
    "tpu.trace_start"() <{level = 10 : i32, message = "nqd,nkd->nqk"}> : () -> ()
    %cst_38 = arith.constant dense<0.000000e+00> : vector<16x8x8xf32>
    %97 = tpu.matmul %74, %85, %cst_38 {dimension_numbers = #tpu.dot_dimension_numbers<[2], [2], [1], [1], [0, 0, 0, 1, 1, 1], [0], [0]>} : vector<16x8x8xbf16>, vector<16x8x8xbf16>, vector<16x8x8xf32> -> vector<16x8x8xf32>
    "tpu.trace_stop"() : () -> ()
    %98 = vector.shape_cast %97 : vector<16x8x8xf32> to vector<4x4x8x8xf32>
    %99 = vector.shape_cast %63 : vector<4x8x8xf32> to vector<1x4x8x8xf32>
    %100 = vector.broadcast %99 : vector<1x4x8x8xf32> to vector<4x4x8x8xf32>
    %101 = arith.addf %98, %100 : vector<4x4x8x8xf32>
    %cst_39 = arith.constant dense<0xFF800000> : vector<4x4x8xf32>
    %102 = vector.multi_reduction <maximumf>, %101, %cst_39 [3] : vector<4x4x8x8xf32> to vector<4x4x8xf32>
    %103 = vector.shape_cast %102 : vector<4x4x8xf32> to vector<4x4x8x1xf32>
    %104 = vector.broadcast %103 : vector<4x4x8x1xf32> to vector<4x4x8x8xf32>
    %105 = arith.subf %101, %104 : vector<4x4x8x8xf32>
    %106 = math.exp %105 : vector<4x4x8x8xf32>
    %cst_40 = arith.constant dense<0.000000e+00> : vector<4x4x8xf32>
    %107 = vector.multi_reduction <add>, %106, %cst_40 [3] : vector<4x4x8x8xf32> to vector<4x4x8xf32>
    %108 = vector.shape_cast %107 : vector<4x4x8xf32> to vector<4x4x8x1xf32>
    %109 = tpu.reciprocal %108 {approx = true} : vector<4x4x8x1xf32> -> vector<4x4x8x1xf32>
    %110 = vector.broadcast %109 : vector<4x4x8x1xf32> to vector<4x4x8x8xf32>
    %111 = arith.mulf %106, %110 : vector<4x4x8x8xf32>
    %112 = vector.shape_cast %111 : vector<4x4x8x8xf32> to vector<16x8x8xf32>
    %113 = arith.truncf %112 : vector<16x8x8xf32> to vector<16x8x8xbf16>
    "tpu.trace_start"() <{level = 10 : i32, message = "nqk,nkd->nqd"}> : () -> ()
    %cst_41 = arith.constant dense<0.000000e+00> : vector<16x8x8xf32>
    %114 = tpu.matmul %113, %96, %cst_41 {dimension_numbers = #tpu.dot_dimension_numbers<[2], [1], [1], [2], [0, 0, 0, 1, 1, 2], [0], [0]>} : vector<16x8x8xbf16>, vector<16x8x8xbf16>, vector<16x8x8xf32> -> vector<16x8x8xf32>
    "tpu.trace_stop"() : () -> ()
    %115 = arith.truncf %114 : vector<16x8x8xf32> to vector<16x8x8xbf16>
    %116 = vector.shape_cast %115 : vector<16x8x8xbf16> to vector<4x4x8x8xbf16>
    %117 = vector.extract_strided_slice %116 {offsets = [0, 0, 0, 0], sizes = [1, 4, 8, 8], strides = [1, 1, 1, 1]} : vector<4x4x8x8xbf16> to vector<1x4x8x8xbf16>
    %118 = vector.shape_cast %117 : vector<1x4x8x8xbf16> to vector<4x8x8xbf16>
    %119 = vector.shape_cast %118 : vector<4x8x8xbf16> to vector<32x8xbf16>
    %120 = vector.extract_strided_slice %116 {offsets = [1, 0, 0, 0], sizes = [1, 4, 8, 8], strides = [1, 1, 1, 1]} : vector<4x4x8x8xbf16> to vector<1x4x8x8xbf16>
    %121 = vector.shape_cast %120 : vector<1x4x8x8xbf16> to vector<4x8x8xbf16>
    %122 = vector.shape_cast %121 : vector<4x8x8xbf16> to vector<32x8xbf16>
    %123 = vector.extract_strided_slice %116 {offsets = [2, 0, 0, 0], sizes = [1, 4, 8, 8], strides = [1, 1, 1, 1]} : vector<4x4x8x8xbf16> to vector<1x4x8x8xbf16>
    %124 = vector.shape_cast %123 : vector<1x4x8x8xbf16> to vector<4x8x8xbf16>
    %125 = vector.shape_cast %124 : vector<4x8x8xbf16> to vector<32x8xbf16>
    %126 = vector.extract_strided_slice %116 {offsets = [3, 0, 0, 0], sizes = [1, 4, 8, 8], strides = [1, 1, 1, 1]} : vector<4x4x8x8xbf16> to vector<1x4x8x8xbf16>
    %127 = vector.shape_cast %126 : vector<1x4x8x8xbf16> to vector<4x8x8xbf16>
    %128 = vector.shape_cast %127 : vector<4x8x8xbf16> to vector<32x8xbf16>
    %129 = tpu.concatenate %119, %122, %125, %128 in 1 : vector<32x8xbf16>, vector<32x8xbf16>, vector<32x8xbf16>, vector<32x8xbf16> -> vector<32x32xbf16>
    %c0_42 = arith.constant 0 : index
    %c0_43 = arith.constant 0 : index
    %c0_44 = arith.constant 0 : index
    %130 = vector.load %arg12[%c0_42, %c0_43, %c0_44] : memref<1x32x32xbf16, #tpu.memory_space<vmem>>, vector<1x32x32xbf16>
    %131 = vector.shape_cast %130 : vector<1x32x32xbf16> to vector<32x32xbf16>
    %cst_45 = arith.constant dense<0.000000e+00> : vector<32x32xf32>
    %132 = tpu.matmul %129, %131, %cst_45 {dimension_numbers = #tpu.dot_dimension_numbers<[1], [0], [0], [1], [0, 0, 1, 1], [], []>} : vector<32x32xbf16>, vector<32x32xbf16>, vector<32x32xf32> -> vector<32x32xf32>
    %c0_46 = arith.constant 0 : index
    %c0_47 = arith.constant 0 : index
    %c0_48 = arith.constant 0 : index
    %133 = vector.load %arg13[%c0_46, %c0_47, %c0_48] : memref<1x1x32xf32, #tpu.memory_space<vmem>>, vector<1x1x32xf32>
    %134 = vector.shape_cast %133 : vector<1x1x32xf32> to vector<1x32xf32>
    %135 = vector.broadcast %134 : vector<1x32xf32> to vector<32x32xf32>
    %136 = arith.addf %132, %135 : vector<32x32xf32>
    %137 = arith.addf %3, %136 : vector<32x32xf32>
    %c0_49 = arith.constant 0 : index
    %c0_50 = arith.constant 0 : index
    %c0_51 = arith.constant 0 : index
    %138 = vector.load %arg14[%c0_49, %c0_50, %c0_51] : memref<1x1x32xf32, #tpu.memory_space<vmem>>, vector<1x1x32xf32>
    %139 = vector.shape_cast %138 : vector<1x1x32xf32> to vector<1x32xf32>
    %c0_52 = arith.constant 0 : index
    %c0_53 = arith.constant 0 : index
    %c0_54 = arith.constant 0 : index
    %140 = vector.load %arg15[%c0_52, %c0_53, %c0_54] : memref<1x1x32xf32, #tpu.memory_space<vmem>>, vector<1x1x32xf32>
    %141 = vector.shape_cast %140 : vector<1x1x32xf32> to vector<1x32xf32>
    %cst_55 = arith.constant dense<0.000000e+00> : vector<32xf32>
    %142 = vector.multi_reduction <add>, %137, %cst_55 [1] : vector<32x32xf32> to vector<32xf32>
    %143 = vector.shape_cast %142 : vector<32xf32> to vector<32x1xf32>
    %cst_56 = arith.constant 3.200000e+01 : f32
    %144 = vector.broadcast %cst_56 : f32 to vector<32x1xf32>
    %145 = arith.divf %143, %144 : vector<32x1xf32>
    %146 = vector.broadcast %145 : vector<32x1xf32> to vector<32x32xf32>
    %147 = arith.subf %137, %146 : vector<32x32xf32>
    %148 = arith.mulf %147, %147 : vector<32x32xf32>
    %cst_57 = arith.constant dense<0.000000e+00> : vector<32xf32>
    %149 = vector.multi_reduction <add>, %148, %cst_57 [1] : vector<32x32xf32> to vector<32xf32>
    %150 = vector.shape_cast %149 : vector<32xf32> to vector<32x1xf32>
    %cst_58 = arith.constant 3.200000e+01 : f32
    %151 = vector.broadcast %cst_58 : f32 to vector<32x1xf32>
    %152 = arith.divf %150, %151 : vector<32x1xf32>
    %cst_59 = arith.constant 9.99999974E-6 : f32
    %153 = vector.broadcast %cst_59 : f32 to vector<32x1xf32>
    %154 = arith.addf %152, %153 : vector<32x1xf32>
    %155 = math.rsqrt %154 : vector<32x1xf32>
    %156 = vector.broadcast %155 : vector<32x1xf32> to vector<32x32xf32>
    %157 = arith.mulf %147, %156 : vector<32x32xf32>
    %158 = vector.broadcast %139 : vector<1x32xf32> to vector<32x32xf32>
    %159 = arith.mulf %157, %158 : vector<32x32xf32>
    %160 = vector.broadcast %141 : vector<1x32xf32> to vector<32x32xf32>
    %161 = arith.addf %159, %160 : vector<32x32xf32>
    %162 = arith.truncf %161 : vector<32x32xf32> to vector<32x32xbf16>
    %c0_60 = arith.constant 0 : index
    %c0_61 = arith.constant 0 : index
    %c0_62 = arith.constant 0 : index
    %163 = vector.load %arg16[%c0_60, %c0_61, %c0_62] : memref<1x32x64xbf16, #tpu.memory_space<vmem>>, vector<1x32x64xbf16>
    %164 = vector.shape_cast %163 : vector<1x32x64xbf16> to vector<32x64xbf16>
    %cst_63 = arith.constant dense<0.000000e+00> : vector<32x64xf32>
    %165 = tpu.matmul %162, %164, %cst_63 {dimension_numbers = #tpu.dot_dimension_numbers<[1], [0], [0], [1], [0, 0, 1, 1], [], []>} : vector<32x32xbf16>, vector<32x64xbf16>, vector<32x64xf32> -> vector<32x64xf32>
    %c0_64 = arith.constant 0 : index
    %c0_65 = arith.constant 0 : index
    %c0_66 = arith.constant 0 : index
    %166 = vector.load %arg17[%c0_64, %c0_65, %c0_66] : memref<1x1x64xf32, #tpu.memory_space<vmem>>, vector<1x1x64xf32>
    %167 = vector.shape_cast %166 : vector<1x1x64xf32> to vector<1x64xf32>
    %168 = vector.broadcast %167 : vector<1x64xf32> to vector<32x64xf32>
    %169 = arith.addf %165, %168 : vector<32x64xf32>
    %cst_67 = arith.constant 1.702000e+00 : f32
    %170 = vector.broadcast %cst_67 : f32 to vector<32x64xf32>
    %171 = arith.mulf %170, %169 : vector<32x64xf32>
    %172 = arith.negf %171 : vector<32x64xf32>
    %173 = math.exp %172 : vector<32x64xf32>
    %cst_68 = arith.constant 1.000000e+00 : f32
    %174 = vector.broadcast %cst_68 : f32 to vector<32x64xf32>
    %175 = arith.addf %174, %173 : vector<32x64xf32>
    %176 = arith.divf %174, %175 : vector<32x64xf32>
    %177 = arith.mulf %169, %176 : vector<32x64xf32>
    %178 = arith.truncf %177 : vector<32x64xf32> to vector<32x64xbf16>
    %c0_69 = arith.constant 0 : index
    %c0_70 = arith.constant 0 : index
    %c0_71 = arith.constant 0 : index
    %179 = vector.load %arg18[%c0_69, %c0_70, %c0_71] : memref<1x64x32xbf16, #tpu.memory_space<vmem>>, vector<1x64x32xbf16>
    %180 = vector.shape_cast %179 : vector<1x64x32xbf16> to vector<64x32xbf16>
    %cst_72 = arith.constant dense<0.000000e+00> : vector<32x32xf32>
    %181 = tpu.matmul %178, %180, %cst_72 {dimension_numbers = #tpu.dot_dimension_numbers<[1], [0], [0], [1], [0, 0, 1, 1], [], []>} : vector<32x64xbf16>, vector<64x32xbf16>, vector<32x32xf32> -> vector<32x32xf32>
    %c0_73 = arith.constant 0 : index
    %c0_74 = arith.constant 0 : index
    %c0_75 = arith.constant 0 : index
    %182 = vector.load %arg19[%c0_73, %c0_74, %c0_75] : memref<1x1x32xf32, #tpu.memory_space<vmem>>, vector<1x1x32xf32>
    %183 = vector.shape_cast %182 : vector<1x1x32xf32> to vector<1x32xf32>
    %184 = vector.broadcast %183 : vector<1x32xf32> to vector<32x32xf32>
    %185 = arith.addf %181, %184 : vector<32x32xf32>
    %186 = arith.addf %137, %185 : vector<32x32xf32>
    %c0_76 = arith.constant 0 : index
    %c0_77 = arith.constant 0 : index
    %187 = vector.load %arg23[%c0_76, %c0_77] : memref<32x32xf32, #tpu.memory_space<vmem>>, vector<32x32xf32>
    tpu.vector_store %arg23[%c0_76, %c0_77], %186 {strides = array<i32>} : memref<32x32xf32, #tpu.memory_space<vmem>>, vector<32x32xf32>,
    %c1_i32 = arith.constant 1 : i32
    %188 = arith.cmpi eq, %arg1, %c1_i32 : i32
    %189 = arith.extui %188 : i1 to i32
    %c0_i32_78 = arith.constant 0 : i32
    %190 = arith.cmpi ne, %189, %c0_i32_78 : i32
    scf.if %190 {
      %c0_79 = arith.constant 0 : index
      %c0_80 = arith.constant 0 : index
      %c0_81 = arith.constant 0 : index
      %191 = vector.load %arg20[%c0_79, %c0_80, %c0_81] : memref<1x1x32xf32, #tpu.memory_space<vmem>>, vector<1x1x32xf32>
      %192 = vector.shape_cast %191 : vector<1x1x32xf32> to vector<1x32xf32>
      %c0_82 = arith.constant 0 : index
      %c0_83 = arith.constant 0 : index
      %c0_84 = arith.constant 0 : index
      %193 = vector.load %arg21[%c0_82, %c0_83, %c0_84] : memref<1x1x32xf32, #tpu.memory_space<vmem>>, vector<1x1x32xf32>
      %194 = vector.shape_cast %193 : vector<1x1x32xf32> to vector<1x32xf32>
      %cst_85 = arith.constant dense<0.000000e+00> : vector<32xf32>
      %195 = vector.multi_reduction <add>, %186, %cst_85 [1] : vector<32x32xf32> to vector<32xf32>
      %196 = vector.shape_cast %195 : vector<32xf32> to vector<32x1xf32>
      %cst_86 = arith.constant 3.200000e+01 : f32
      %197 = vector.broadcast %cst_86 : f32 to vector<32x1xf32>
      %198 = arith.divf %196, %197 : vector<32x1xf32>
      %199 = vector.broadcast %198 : vector<32x1xf32> to vector<32x32xf32>
      %200 = arith.subf %186, %199 : vector<32x32xf32>
      %201 = arith.mulf %200, %200 : vector<32x32xf32>
      %cst_87 = arith.constant dense<0.000000e+00> : vector<32xf32>
      %202 = vector.multi_reduction <add>, %201, %cst_87 [1] : vector<32x32xf32> to vector<32xf32>
      %203 = vector.shape_cast %202 : vector<32xf32> to vector<32x1xf32>
      %cst_88 = arith.constant 3.200000e+01 : f32
      %204 = vector.broadcast %cst_88 : f32 to vector<32x1xf32>
      %205 = arith.divf %203, %204 : vector<32x1xf32>
      %cst_89 = arith.constant 9.99999974E-6 : f32
      %206 = vector.broadcast %cst_89 : f32 to vector<32x1xf32>
      %207 = arith.addf %205, %206 : vector<32x1xf32>
      %208 = math.rsqrt %207 : vector<32x1xf32>
      %209 = vector.broadcast %208 : vector<32x1xf32> to vector<32x32xf32>
      %210 = arith.mulf %200, %209 : vector<32x32xf32>
      %211 = vector.broadcast %192 : vector<1x32xf32> to vector<32x32xf32>
      %212 = arith.mulf %210, %211 : vector<32x32xf32>
      %213 = vector.broadcast %194 : vector<1x32xf32> to vector<32x32xf32>
      %214 = arith.addf %212, %213 : vector<32x32xf32>
      %215 = vector.shape_cast %214 : vector<32x32xf32> to vector<4x8x32xf32>
      %216 = arith.truncf %215 : vector<4x8x32xf32> to vector<4x8x32xbf16>
      %c0_90 = arith.constant 0 : index
      %c0_91 = arith.constant 0 : index
      %c0_92 = arith.constant 0 : index
      %217 = vector.load %arg22[%c0_90, %c0_91, %c0_92] : memref<4x8x32xbf16, #tpu.memory_space<vmem>>, vector<4x8x32xbf16>
      tpu.vector_store %arg22[%c0_90, %c0_91, %c0_92], %216 {strides = array<i32>} : memref<4x8x32xbf16, #tpu.memory_space<vmem>>, vector<4x8x32xbf16>,
    } else {
    }
    return
  }
  func.func @transform_0(%arg0: i32, %arg1: i32) -> (i32, i32, i32) {
    %c0_i32 = arith.constant 0 : i32
    %c0_i32_0 = arith.constant 0 : i32
    %c0_i32_1 = arith.constant 0 : i32
    return %arg0, %c0_i32, %c0_i32_0 : i32, i32, i32
  }
  func.func @transform_1(%arg0: i32, %arg1: i32) -> (i32, i32, i32) {
    %c0_i32 = arith.constant 0 : i32
    %c0_i32_0 = arith.constant 0 : i32
    %c0_i32_1 = arith.constant 0 : i32
    return %arg0, %c0_i32, %c0_i32_0 : i32, i32, i32
  }
  func.func @transform_2(%arg0: i32, %arg1: i32) -> (i32, i32, i32) {
    %c0_i32 = arith.constant 0 : i32
    %c0_i32_0 = arith.constant 0 : i32
    %c0_i32_1 = arith.constant 0 : i32
    return %arg1, %c0_i32, %c0_i32_0 : i32, i32, i32
  }
  func.func @transform_3(%arg0: i32, %arg1: i32) -> (i32, i32, i32) {
    %c0_i32 = arith.constant 0 : i32
    %c0_i32_0 = arith.constant 0 : i32
    %c0_i32_1 = arith.constant 0 : i32
    return %arg1, %c0_i32, %c0_i32_0 : i32, i32, i32
  }
  func.func @transform_4(%arg0: i32, %arg1: i32) -> (i32, i32, i32) {
    %c0_i32 = arith.constant 0 : i32
    %c0_i32_0 = arith.constant 0 : i32
    %c0_i32_1 = arith.constant 0 : i32
    return %arg1, %c0_i32, %c0_i32_0 : i32, i32, i32
  }
  func.func @transform_5(%arg0: i32, %arg1: i32) -> (i32, i32, i32) {
    %c0_i32 = arith.constant 0 : i32
    %c0_i32_0 = arith.constant 0 : i32
    %c0_i32_1 = arith.constant 0 : i32
    return %arg1, %c0_i32, %c0_i32_0 : i32, i32, i32
  }
  func.func @transform_6(%arg0: i32, %arg1: i32) -> (i32, i32, i32) {
    %c0_i32 = arith.constant 0 : i32
    %c0_i32_0 = arith.constant 0 : i32
    %c0_i32_1 = arith.constant 0 : i32
    return %arg1, %c0_i32, %c0_i32_0 : i32, i32, i32
  }
  func.func @transform_7(%arg0: i32, %arg1: i32) -> (i32, i32, i32) {
    %c0_i32 = arith.constant 0 : i32
    %c0_i32_0 = arith.constant 0 : i32
    %c0_i32_1 = arith.constant 0 : i32
    return %arg1, %c0_i32, %c0_i32_0 : i32, i32, i32
  }
  func.func @transform_8(%arg0: i32, %arg1: i32) -> (i32, i32, i32) {
    %c0_i32 = arith.constant 0 : i32
    %c0_i32_0 = arith.constant 0 : i32
    %c0_i32_1 = arith.constant 0 : i32
    return %arg1, %c0_i32, %c0_i32_0 : i32, i32, i32
  }
  func.func @transform_9(%arg0: i32, %arg1: i32) -> (i32, i32, i32) {
    %c0_i32 = arith.constant 0 : i32
    %c0_i32_0 = arith.constant 0 : i32
    %c0_i32_1 = arith.constant 0 : i32
    return %arg1, %c0_i32, %c0_i32_0 : i32, i32, i32
  }
  func.func @transform_10(%arg0: i32, %arg1: i32) -> (i32, i32, i32) {
    %c0_i32 = arith.constant 0 : i32
    %c0_i32_0 = arith.constant 0 : i32
    %c0_i32_1 = arith.constant 0 : i32
    return %arg1, %c0_i32, %c0_i32_0 : i32, i32, i32
  }
  func.func @transform_11(%arg0: i32, %arg1: i32) -> (i32, i32, i32) {
    %c0_i32 = arith.constant 0 : i32
    %c0_i32_0 = arith.constant 0 : i32
    %c0_i32_1 = arith.constant 0 : i32
    return %arg1, %c0_i32, %c0_i32_0 : i32, i32, i32
  }
  func.func @transform_12(%arg0: i32, %arg1: i32) -> (i32, i32, i32) {
    %c0_i32 = arith.constant 0 : i32
    %c0_i32_0 = arith.constant 0 : i32
    %c0_i32_1 = arith.constant 0 : i32
    return %arg1, %c0_i32, %c0_i32_0 : i32, i32, i32
  }
  func.func @transform_13(%arg0: i32, %arg1: i32) -> (i32, i32, i32) {
    %c0_i32 = arith.constant 0 : i32
    %c0_i32_0 = arith.constant 0 : i32
    %c0_i32_1 = arith.constant 0 : i32
    return %arg1, %c0_i32, %c0_i32_0 : i32, i32, i32
  }
  func.func @transform_14(%arg0: i32, %arg1: i32) -> (i32, i32, i32) {
    %c0_i32 = arith.constant 0 : i32
    %c0_i32_0 = arith.constant 0 : i32
    %c0_i32_1 = arith.constant 0 : i32
    return %arg1, %c0_i32, %c0_i32_0 : i32, i32, i32
  }
  func.func @transform_15(%arg0: i32, %arg1: i32) -> (i32, i32, i32) {
    %c0_i32 = arith.constant 0 : i32
    %c0_i32_0 = arith.constant 0 : i32
    %c0_i32_1 = arith.constant 0 : i32
    return %arg1, %c0_i32, %c0_i32_0 : i32, i32, i32
  }
  func.func @transform_16(%arg0: i32, %arg1: i32) -> (i32, i32, i32) {
    %c0_i32 = arith.constant 0 : i32
    %c0_i32_0 = arith.constant 0 : i32
    %c0_i32_1 = arith.constant 0 : i32
    return %arg1, %c0_i32, %c0_i32_0 : i32, i32, i32
  }
  func.func @transform_17(%arg0: i32, %arg1: i32) -> (i32, i32, i32) {
    %c0_i32 = arith.constant 0 : i32
    %c0_i32_0 = arith.constant 0 : i32
    %c0_i32_1 = arith.constant 0 : i32
    return %arg1, %c0_i32, %c0_i32_0 : i32, i32, i32
  }
  func.func @transform_18(%arg0: i32, %arg1: i32) -> (i32, i32, i32) {
    %c0_i32 = arith.constant 0 : i32
    %c0_i32_0 = arith.constant 0 : i32
    %c0_i32_1 = arith.constant 0 : i32
    %c0_i32_2 = arith.constant 0 : i32
    return %c0_i32, %c0_i32_0, %c0_i32_1 : i32, i32, i32
  }
  func.func @transform_19(%arg0: i32, %arg1: i32) -> (i32, i32, i32) {
    %c0_i32 = arith.constant 0 : i32
    %c0_i32_0 = arith.constant 0 : i32
    %c0_i32_1 = arith.constant 0 : i32
    %c0_i32_2 = arith.constant 0 : i32
    return %c0_i32, %c0_i32_0, %c0_i32_1 : i32, i32, i32
  }
  func.func @transform_20(%arg0: i32, %arg1: i32) -> (i32, i32, i32) {
    %c0_i32 = arith.constant 0 : i32
    %c0_i32_0 = arith.constant 0 : i32
    %c0_i32_1 = arith.constant 0 : i32
    return %arg0, %c0_i32, %c0_i32_0 : i32, i32, i32
  }
}

</mosaic_0001>

<bundles_post_ra>
// kernel: tpu_custom_call.1
= control target key start
LH: loop header
LB: loop body
LE: loop exit
PB: predicated region body
PF: predicated region fallthrough
CT: control target
= control target key end

     0   :  { %s5913_s0 = inlined_call_operand.vmem [shape: f32[4,8,32], index: 0, kind: input, shape index: {}]   ;;  %s5914_s1 = inlined_call_operand.hbm [shape: f32[4,1,8], index: 1, kind: input, shape index: {}]   ;;  %s5915_s2 = inlined_call_operand.vmem [shape: f32[2,1,32], index: 2, kind: input, shape index: {}]   ;;  %s5916_s3 = inlined_call_operand.vmem [shape: f32[2,1,32], index: 3, kind: input, shape index: {}]   ;;  %s5917_s4 = inlined_call_operand.vmem [shape: bf16[2,32,32], index: 4, kind: input, shape index: {}]   ;;  %s5918_s5 = inlined_call_operand.vmem [shape: f32[2,1,32], index: 5, kind: input, shape index: {}]   ;;  %s5919_s6 = inlined_call_operand.vmem [shape: bf16[2,32,32], index: 6, kind: input, shape index: {}]   ;;  %s5920_s7 = inlined_call_operand.vmem [shape: f32[2,1,32], index: 7, kind: input, shape index: {}]   ;;  %s5921_s8 = inlined_call_operand.hbm [shape: bf16[2,32,32], index: 8, kind: input, shape index: {}]   ;;  %s5922_s9 = inlined_call_operand.vmem [shape: f32[2,1,32], index: 9, kind: input, shape index: {}]   ;;  %s5923_s10 = inlined_call_operand.hbm [shape: bf16[2,32,32], index: 10, kind: input, shape index: {}]   ;;  %s5924_s11 = inlined_call_operand.vmem [shape: f32[2,1,32], index: 11, kind: input, shape index: {}]   ;;  %s5925_s12 = inlined_call_operand.vmem [shape: f32[2,1,32], index: 12, kind: input, shape index: {}]   ;;  %s5926_s13 = inlined_call_operand.vmem [shape: f32[2,1,32], index: 13, kind: input, shape index: {}]   ;;  %s5927_s14 = inlined_call_operand.hbm [shape: bf16[2,32,64], index: 14, kind: input, shape index: {}]   ;;  %s5928_s15 = inlined_call_operand.vmem [shape: f32[2,1,64], index: 15, kind: input, shape index: {}]   ;;  %s5929_s16 = inlined_call_operand.vmem [shape: bf16[2,64,32], index: 16, kind: input, shape index: {}]   ;;  %s5930_s17 = inlined_call_operand.vmem [shape: f32[2,1,32], index: 17, kind: input, shape index: {}]   ;;  %s5931_s18 = inlined_call_operand.vmem [shape: f32[1,1,32], index: 18, kind: input, shape index: {}]   ;;  %s5932_s19 = inlined_call_operand.vmem [shape: f32[1,1,32], index: 19, kind: input, shape index: {}]   ;;  %s5933_s20 = inlined_call_operand.hbm [shape: bf16[4,8,32], index: 20, kind: output, shape index: {}]  }
   0x1   :  { %5954 = sst [smem:[#allocation21_spill]] %s5913_s0 }
   0x2   :  { %5955 = sst [smem:[#allocation22_spill]] %s5914_s1 }
   0x3   :  { %5956 = sst [smem:[#allocation23_spill]] %s5915_s2 }
   0x4   :  { %5957 = sst [smem:[#allocation24_spill]] %s5916_s3 }
   0x5   :  { %5958 = sst [smem:[#allocation25_spill]] %s5917_s4 }
   0x6   :  { %5959 = sst [smem:[#allocation26_spill]] %s5919_s6 }
   0x7   :  { %5960 = sst [smem:[#allocation27_spill]] %s5921_s8 }
   0x8   :  { %5961 = sst [smem:[#allocation28_spill]] %s5922_s9 }
   0x9   :  { %5962 = sst [smem:[#allocation29_spill]] %s5923_s10 }
   0xa   :  { %5963 = sst [smem:[#allocation30_spill]] %s5924_s11 }
   0xb   :  { %5964 = sst [smem:[#allocation31_spill]] %s5925_s12 }
   0xc   :  { %5965 = sst [smem:[#allocation32_spill]] %s5926_s13 }
   0xd   :  { %5966 = sst [smem:[#allocation33_spill]] %s5927_s14 }
   0xe   :  { %5967 = sst [smem:[#allocation34_spill]] %s5928_s15 }
   0xf   :  { %5968 = sst [smem:[#allocation35_spill]] %s5929_s16 }
  0x10   :  { %5969 = sst [smem:[#allocation36_spill]] %s5930_s17 }
  0x11   :  { %5970 = sst [smem:[#allocation37_spill]] %s5931_s18 }
  0x12   :  { %5971 = sst [smem:[#allocation38_spill]] %s5932_s19 }
  0x13   :  { %5972 = sst [smem:[#allocation39_spill]] %s5933_s20 }
  0x14   :  { %25 = vsyncpa [#allocation4], 0 }
  0x15   :  { %26 = vsyncpa [#allocation7], 0 }
  0x16   :  { %28 = vsyncpa [#allocation7 + $0x1], 0 }
  0x17   :  { %29 = vsyncpa [#allocation10], 0 }
  0x18   :  { %31 = vsyncpa [#allocation10 + $0x1], 0 }
  0x19   :  { %32 = vsyncpa [#allocation5], 0  ;;  %s4978_s1 = smov 0   ;;  %s4980_s22 = smov 0  }
  0x1a   :  { %s4982_s23 = smov 0   ;;  %s4984_s24 = smov 0  }
  0x1b   :  { %s4986_s2 = smov 0   ;;  %s4988_s25 = smov 0  }
  0x1c LB: > { %5973 = sst [smem:[#allocation16_spill]] %s4839_s23  ;;  %s47_s3 = sadd.s32 1, %s4847_s2  ;;  %s4851_s25 = sphi %s4988_s25, %s38_s25   ;;  %s4847_s2 = sphi %s4986_s2, %s6035_s2   ;;  %s4843_s24 = sphi %s4984_s24, %s6034_s24   ;;  %s4839_s23 = sphi %s4982_s23, %s6033_s23   ;;  %s4835_s22 = sphi %s4980_s22, %s6037_s22   ;;  %s4831_s1 = sphi %s4978_s1, %s6036_s1  }
  0x1d   : > { %5974 = sst [smem:[#allocation17_spill]] %s4847_s2  ;;  %s265_s26 = sadd.s32 1, %s4839_s23 }
  0x1e   : > { %5975 = sst [smem:[#allocation18_spill]] %s4851_s25  ;;  %p48_p0 = scmp.ge.s32.totalorder %s47_s3, 2 }
  0x1f   : > { %p272_p1 = scmp.ne.s32.totalorder %s4839_s23, %s4835_s22  ;;  %p273_p2 = scmp.eq.s32.totalorder %s4851_s25, 0 }
  0x20   : > { %s6039_s3 = smov (%p48_p0, %s47_s3), 0  ;;  %p4454_p4 = scmp.lt.s32.totalorder %s4851_s25, 2 }
  0x21   : > { %5976 = sst [smem:[#allocation19_spill]] %s6039_s3  ;;  %p274_p3 = por %p273_p2, %p272_p1 }
  0x22   : > { %s262_s27 = ssub.s32 %s4847_s2, %s6039_s3  ;;  %s675_s28 = sand.u32 1, %s4851_s25  }
  0x23   : > { %p263_p5 = scmp.eq.s32.totalorder %s262_s27, 0  ;;  %s5938_s4 = sand.u32 1, %s4839_s23  }
  0x24   : > { %s5021_s29 = sshll.u32 %s4847_s2, 8  ;;  %s5028_s0 = sshll.u32 %s5938_s4, 4 }
  0x25   : > { %s5024_s30 = scalar_select %p263_p5, %s4839_s23, %s265_s26  }
  0x26   : > { %s5978_s8 = sld [smem:[#allocation27_spill]]  ;;  %p5036_p6 = pnand %p4454_p4, %p274_p3 }
  0x27   : > { %5977 = sst [smem:[#allocation20_spill]] %s5024_s30  ;;  %s679_s26 = scalar_lea.vmem [#allocation6], %s5028_s0 }
  0x28   : > { %s5979_s27 = scalar_select %p5036_p6, 1, 0 }
  0x29   : > { %s686_s3 = sshll.u32 %s679_s26, 4  ;;  %s5043_s4 = scalar_lea.sflag [#allocation7], %s675_s28  ;;  %s5041_s3 = int_to_ptr.vmem [resolvable:$true] %s686_s3 }
  0x2a   : > { %p5049_p8 = pneg %p5036_p6 }
  0x2c   : > { %s5034_s19 = scalar_lea.hbm %s5978_s8, %s5021_s29  ;;  %s4650_s18 = scalar_lea.hbm %s5978_s8, 512 }
  0x2d   : > { %s4645_s2 = scalar_lea.hbm %s5034_s19, 256  ;;  %p4651_p11 = scmp.lt.u32.totalorder %s5034_s19, %s5978_s8 }
  0x2e   : > { %p4646_p7 = scmp.ne.s32.totalorder %s5034_s19, %s4645_s2  ;;  %p4652_p12 = scmp.lt.u32.totalorder %s4650_s18, %s4645_s2 }
  0x2f   : > { %s5980_s20 = scalar_select %p5049_p8, 1, 0 }
  0x30   : > { %p4648_p9 = pnand %p5049_p8, %p4646_p7  ;;  %p4653_p13 = por %p4652_p12, %p4651_p11 }
  0x31   : > { %p4654_p0 = scmp.lt.u32.totalorder %s4645_s2, %s5034_s19 }
  0x32   : > { %p4649_p10 = pneg %p4648_p9 }
  0x33   : > { %p4655_p1 = por %p4654_p0, %p4653_p13 }
  0x35   : > { %p4656_p2 = pnand %p4655_p1, %p4649_p10 }
  0x37   : > { %4659 = shalt.err (!%p4656_p2)
}
  0x38   : > { %s4660_s28 = scalar_lea.vmem %s5041_s3, 256  ;;  %s4853_s30 = smov [#allocation6]  }
  0x39   : > { %p4661_p3 = scmp.ne.s32.totalorder %s5041_s3, %s4660_s28  ;;  %s4665_s21 = sshll.u32 %s4853_s30, 4  ;;  %s4666_s21 = int_to_ptr.vmem [resolvable:$false] %s4665_s21 }
  0x3a   : > { %s4667_s16 = scalar_lea.vmem %s4666_s21, 512  ;;  %p4668_p7 = scmp.lt.s32.totalorder %s5041_s3, %s4666_s21 }
  0x3b   : > { %p4663_p4 = pnand %p4661_p3, %p5049_p8  ;;  %p4669_p9 = scmp.lt.s32.totalorder %s4667_s16, %s4660_s28 }
  0x3d   : > { %p4664_p5 = pneg %p4663_p4  ;;  %p4670_p11 = por %p4669_p9, %p4668_p7 }
  0x3f   : > { %p4671_p12 = pnand %p4670_p11, %p4664_p5 }
  0x41   : > { %4674 = shalt.err (!%p4671_p12)
}
  0x42   : > { %s5940_s18 = smov 64   ;;  %s5942_s2 = smov 4  }
  0x43   : > { %4446 = dma.hbm_to_vmem [thread:$0]  (!%p5036_p6), %s5034_s19, 256, %s5041_s3, %s5043_s4, %s5940_s18, %s5940_s18, %s5942_s2  }
  0x44   : > { %s5077_s26 = sadd.s32 4294967295, %s4851_s25   ;;  %p278_p10 = scmp.ne.s32.totalorder %s4835_s22, %s4831_s1 }
  0x45   : > { %p5945_p13 = scmp.eq.s32.totalorder %s5077_s26, 0  ;;  %p3937_p0 = scmp.ge.s32.totalorder %s4851_s25, 1 }
  0x46   : > { %p591_p1 = scmp.lt.s32.totalorder %s4851_s25, 3  ;;  %s4856_s19 = smov [#allocation3]  }
  0x47   : > { %p5086_p2 = por %p5945_p13, %p278_p10  ;;  %s615_s3 = sshll.u32 %s4856_s19, 4  ;;  %s616_s3 = int_to_ptr.vmem [resolvable:$true] %s615_s3 }
  0x48   : > { %p5090_p3 = pnand %p3937_p0, %p591_p1  ;;  %s5984_s10 = sld [smem:[#allocation29_spill]] }
  0x49   : > { %s5981_s28 = scalar_select %p5086_p2, 1, 0 }
  0x4a   : > { %s5982_s30 = scalar_select %p5090_p3, 1, 0 }
  0x4b   : > { %p4439_p4 = pneg %p5090_p3  ;;  %s706_s2 = scalar_lea.vmem [#allocation8], %s5028_s0 }
  0x4c   : > { %s713_s8 = sshll.u32 %s706_s2, 4  ;;  %s5985_s17 = sld [smem:[#allocation22_spill]]  ;;  %s5109_s8 = int_to_ptr.vmem [resolvable:$true] %s713_s8 }
  0x4d   : > { %p5098_p5 = pnand %p4439_p4, %p5945_p13 }
  0x4e   : > { %s5106_s18 = scalar_lea.hbm %s5984_s10, %s5021_s29 }
  0x4f   : > { %p4677_p9 = pneg %p5098_p5 }
  0x52   : > { %s4675_s15 = scalar_lea.hbm %s5985_s17, 64 }
  0x53   : > { %p4676_p7 = scmp.ne.s32.totalorder %s5985_s17, %s4675_s15  ;;  %p4682_p10 = scmp.lt.u32.totalorder %s4675_s15, %s5985_s17 }
  0x55   : > { %p4678_p11 = pnand %p4677_p9, %p4676_p7 }
  0x57   : > { %p4679_p12 = pneg %p4678_p11 }
  0x59   : > { %p4684_p0 = pnand %p4682_p10, %p4679_p12 }
  0x5b   : > { %4687 = shalt.err (!%p4684_p0)
}
  0x5c   : > { %s4688_s2 = scalar_lea.vmem %s616_s3, 64  ;;  %p4696_p2 = scmp.lt.s32.totalorder %s616_s3, %s616_s3 }
  0x5d   : > { %p4689_p1 = scmp.ne.s32.totalorder %s616_s3, %s4688_s2  ;;  %p4697_p3 = scmp.lt.s32.totalorder %s4688_s2, %s4688_s2 }
  0x5f   : > { %p4691_p4 = pnand %p4689_p1, %p4677_p9  ;;  %p4698_p6 = por %p4697_p3, %p4696_p2 }
  0x61   : > { %p4692_p13 = pneg %p4691_p4 }
  0x63   : > { %p4699_p8 = pnand %p4698_p6, %p4692_p13 }
  0x65   : > { %4702 = shalt.err (!%p4699_p8)
}
  0x66   : > { %s4857_s12 = smov 16   ;;  %s4858_s13 = smov 1  }
  0x67   : > { %4442 = dma.hbm_to_vmem [thread:$0]  (!%p5098_p5), %s5985_s17, 64, %s616_s3, [#allocation4], %s4857_s12, %s4857_s12, %s4858_s13  }
  0x68   : > { %s4703_s19 = scalar_lea.hbm %s5106_s18, 256  ;;  %p5986_p9 = scmp.ne.s32.totalorder %s5980_s20, 0 }
  0x69   : > { %p4704_p7 = scmp.ne.s32.totalorder %s5106_s18, %s4703_s19  ;;  %s4708_s2 = scalar_lea.hbm %s5984_s10, 512 }
  0x6a   : > { %p4709_p6 = scmp.lt.u32.totalorder %s5106_s18, %s5984_s10  ;;  %p4710_p8 = scmp.lt.u32.totalorder %s4708_s2, %s4703_s19 }
  0x6b   : > { %p4706_p11 = pnand %p4704_p7, %p5986_p9  ;;  %p4712_p3 = scmp.lt.u32.totalorder %s4703_s19, %s5106_s18 }
  0x6c   : > { %p4711_p13 = por %p4710_p8, %p4709_p6 }
  0x6d   : > { %p4707_p2 = pneg %p4706_p11 }
  0x6e   : > { %p4713_p12 = por %p4712_p3, %p4711_p13 }
  0x70   : > { %p4714_p10 = pnand %p4713_p12, %p4707_p2 }
  0x72   : > { %4717 = shalt.err (!%p4714_p10)
}
  0x73   : > { %s4718_s3 = scalar_lea.vmem %s5109_s8, 256  ;;  %s4859_s1 = smov [#allocation8]  }
  0x74   : > { %p4719_p5 = scmp.ne.s32.totalorder %s5109_s8, %s4718_s3  ;;  %s4723_s12 = sshll.u32 %s4859_s1, 4  ;;  %s4724_s12 = int_to_ptr.vmem [resolvable:$false] %s4723_s12 }
  0x75   : > { %s4725_s9 = scalar_lea.vmem %s4724_s12, 512  ;;  %p4726_p4 = scmp.lt.s32.totalorder %s5109_s8, %s4724_s12 }
  0x76   : > { %p4721_p0 = pnand %p4719_p5, %p5986_p9  ;;  %p4727_p7 = scmp.lt.s32.totalorder %s4725_s9, %s4718_s3 }
  0x78   : > { %p4722_p1 = pneg %p4721_p0  ;;  %p4728_p11 = por %p4727_p7, %p4726_p4 }
  0x7a   : > { %p4729_p6 = pnand %p4728_p11, %p4722_p1 }
  0x7c   : > { %4732 = shalt.err (!%p4729_p6)
}
  0x7d   : > { %p5987_p2 = scmp.ne.s32.totalorder %s5979_s27, 0  ;;  %s5988_s11 = smov 4  }
  0x7e   : > { %s5989_s13 = smov 64   ;;  %s5990_s14 = sld [smem:[#allocation33_spill]] }
  0x7f   : > { %4449 = dma.hbm_to_vmem [thread:$0]  (!%p5987_p2), %s5106_s18, 256, %s5109_s8, %s5043_s4, %s5989_s13, %s5989_s13, %s5988_s11  }
  0x80   : > { %s745_s21 = scalar_lea.vmem [#allocation9], %s5028_s0  ;;  %s5991_s2 = sand.u32 1, %s4839_s23  }
  0x81   : > { %s752_s16 = sshll.u32 %s745_s21, 4  ;;  %s5163_s3 = scalar_lea.sflag [#allocation10], %s5991_s2  ;;  %s5159_s16 = int_to_ptr.vmem [resolvable:$true] %s752_s16 }
  0x84   : > { %s5156_s19 = scalar_lea.hbm %s5990_s14, %s5021_s29  ;;  %s4738_s29 = scalar_lea.hbm %s5990_s14, 512 }
  0x85   : > { %s4733_s1 = scalar_lea.hbm %s5156_s19, 256  ;;  %p4739_p12 = scmp.lt.u32.totalorder %s5156_s19, %s5990_s14 }
  0x86   : > { %p4734_p8 = scmp.ne.s32.totalorder %s5156_s19, %s4733_s1  ;;  %p4740_p10 = scmp.lt.u32.totalorder %s4738_s29, %s4733_s1 }
  0x87   : > { %p4742_p0 = scmp.lt.u32.totalorder %s4733_s1, %s5156_s19 }
  0x88   : > { %p4736_p13 = pnand %p4734_p8, %p5986_p9  ;;  %p4741_p5 = por %p4740_p10, %p4739_p12 }
  0x8a   : > { %p4737_p3 = pneg %p4736_p13  ;;  %p4743_p1 = por %p4742_p0, %p4741_p5 }
  0x8c   : > { %p4744_p4 = pnand %p4743_p1, %p4737_p3 }
  0x8e   : > { %4747 = shalt.err (!%p4744_p4)
}
  0x8f   : > { %s4748_s0 = scalar_lea.vmem %s5159_s16, 256  ;;  %s4860_s9 = smov [#allocation9]  }
  0x90   : > { %p4749_p7 = scmp.ne.s32.totalorder %s5159_s16, %s4748_s0  ;;  %s4753_s15 = sshll.u32 %s4860_s9, 4  ;;  %s4754_s15 = int_to_ptr.vmem [resolvable:$false] %s4753_s15 }
  0x91   : > { %s4755_s25 = scalar_lea.vmem %s4754_s15, 512  ;;  %p4756_p8 = scmp.lt.s32.totalorder %s5159_s16, %s4754_s15 }
  0x92   : > { %p4751_p11 = pnand %p4749_p7, %p5986_p9  ;;  %p4757_p13 = scmp.lt.s32.totalorder %s4755_s25, %s4748_s0 }
  0x94   : > { %p4752_p6 = pneg %p4751_p11  ;;  %p4758_p12 = por %p4757_p13, %p4756_p8 }
  0x96   : > { %p4759_p10 = pnand %p4758_p12, %p4752_p6 }
  0x98   : > { %4762 = shalt.err (!%p4759_p10)
}
  0x99   : > { %4452 = dma.hbm_to_vmem [thread:$0]  (!%p5987_p2), %s5156_s19, 256, %s5159_s16, %s5163_s3, %s5989_s13, %s5989_s13, %s5988_s11  }
  0x9a   : > { %p5992_p9 = scmp.ne.s32.totalorder %s5982_s30, 0 }
  0x9b   : > { %p5993_p3 = scmp.eq.s32.totalorder (!%p5992_p9), %s5077_s26, 0 }
  0x9c   : > { %784 = sbr.rel (%p5992_p9) target bundleno = 3181 (0xc6d), region = 100 }
  0xa3   : > { %4814 = dma.done.wait (%p5993_p3), [#allocation4], 64   ;;  %p5994_p5 = pmov %p5993_p3 }
  0xa4   : > { %s790_s27 = sand.u32 1, %s5077_s26   ;;  %s792_s20 = sand.u32 1, %s4835_s22  }
  0xa5   : > { %4816 = vsyncadd (%p5994_p5), [#allocation4], 4294967232  ;;  %s5198_s21 = sshll.u32 %s792_s20, 4  ;;  %s791_s2 = scalar_lea.sflag [#allocation7], %s790_s27 }
  0xa6   : > { %p5995_p2 = scmp.ne.s32.totalorder %s5981_s28, 0 }
  0xa8   : > { %4818 = dma.done.wait (%p5995_p2), %s791_s2, 512  }
  0xa9   : > { %4820 = vsyncadd (%p5995_p2), %s791_s2, 4294966784  ;;  %s809_s11 = scalar_lea.sflag [#allocation10], %s792_s20 }
  0xaa   : > { %4822 = dma.done.wait (%p5995_p2), %s809_s11, 256  }
  0xab   : > { %4824 = vsyncadd (%p5995_p2), %s809_s11, 4294967040  ;;  %p931_p0 = scmp.lt.s32.totalorder %s4843_s24, 1  ;;  %s5998_s2 = sld [smem:[#allocation25_spill]] }
  0xac   : > { %s5999_s6 = sld [smem:[#allocation26_spill]]  ;;  %s6001_s25 = sld [smem:[#allocation30_spill]] }
  0xad   : > { %s5213_s19 = scalar_select %p931_p0, %s4843_s24, 1 }
  0xae   : > { %s6004_s30 = sld [smem:[#allocation34_spill]]  ;;  %s6005_s12 = sld [smem:[#allocation36_spill]] }
  0xaf   : > { %s4068_s0 = sshll.u32 %s5213_s19, 4  ;;  %s4070_s4 = sshll.u32 %s5213_s19, 5 }
  0xb0   : > { %p3961_p1 = scmp.ne.s32.totalorder %s4843_s24, 0 }
  0xb1   : > { %s5231_s11 = scalar_lea.vmem %s5998_s2, %s4068_s0  ;;  %s6002_s2 = sld [smem:[#allocation31_spill]]  ;;  %vm986_vm0 = vcmask (!%p3961_p1), 261120  }
  0xb2   : > { %s5236_s13 = scalar_lea.vmem %s5999_s6, %s4068_s0  ;;  %s958_s1 = scalar_lea.vmem %s6001_s25, %s5213_s19 }
  0xb3   : > { %s6003_s0 = sld [smem:[#allocation32_spill]]  ;;  %s6006_s25 = sld [smem:[#allocation35_spill]] }
  0xb4   : > { %s967_s8 = scalar_lea.vmem %s6004_s30, %s5213_s19  ;;  %s975_s18 = scalar_lea.vmem %s6005_s12, %s5213_s19 }
  0xb5   : > { %981 = sbr.rel (%p3961_p1) target bundleno = 190 (0xbe), region = 120  ;;  %s6007_s20 = sld [smem:[#allocation21_spill]] (!%p3961_p1) }
  0xb7   : > { %s961_s10 = scalar_lea.vmem %s6002_s2, %s5213_s19 }
  0xb9   : > { %s964_s3 = scalar_lea.vmem %s6003_s0, %s5213_s19  ;;  %s5270_s15 = scalar_lea.vmem %s6006_s25, %s4070_s4 }
  0xbb   : > { %v982_v0 = vld [vmem:[%s6007_s20] sm:$0xff] (!%p3961_p1)  ;;  %v983_v1 = vld [vmem:[%s6007_s20 + $0x8] sm:$0xff] (!%p3961_p1)  ;;  %v984_v2 = vld [vmem:[%s6007_s20 + $0x10] sm:$0xff] (!%p3961_p1) }
  0xbc   : > { %987 = vst.msk [vmem:[#allocation2] sm:$0xff] %vm986_vm0, %v982_v0  ;;  %988 = vst.msk [vmem:[#allocation2 + $0x8] sm:$0xff] %vm986_vm0, %v983_v1  ;;  %v985_v3 = vld [vmem:[%s6007_s20 + $0x18] sm:$0xff] }
  0xbd   : > { %989 = vst.msk [vmem:[#allocation2 + $0x10] sm:$0xff] %vm986_vm0, %v984_v2  ;;  %990 = vst.msk [vmem:[#allocation2 + $0x18] sm:$0xff] %vm986_vm0, %v985_v3 }
  0xbe PF: > { %vm997_vm1 = vcmask 261120   ;;  %v4523_v32 = vld [vmem:[%s5231_s11] sm:$0xff]   ;;  %v4525_v34 = vld [vmem:[%s5231_s11 + $0x8] sm:$0xff]   ;;  %s6008_s16 = scalar_lea.vmem [#allocation6], %s5198_s21  ;;  %s6009_s0 = sld [smem:[#allocation23_spill]]  ;;  %vm4862_vm2 = vmmov 0  }
  0xbf   : > { %v4524_v33 = vld [vmem:[%s5236_s13] sm:$0xff]   ;;  %4181 = vmatprep.subr.bf16.mxu0 %v4523_v32  ;;  %v4526_v35 = vld [vmem:[%s5236_s13 + $0x8] sm:$0xff]   ;;  %s6011_s9 = sld [smem:[#allocation24_spill]]  ;;  %s6013_s27 = smov %s6008_s16  ;;  %vm1441_vm3 = vcmask 64512   ;;  %vm2389_vm4 = vcmask 1043456   ;;  %vm3197_vm6 = vcmask 130048  }
  0xc0   : > { %4189 = vmatprep.subr.bf16.mxu1 %v4524_v33  ;;  %4182 = vmatpush3.bf16.msra.mxu0 %v4523_v32  ;;  %v4527_v36 = vld [vmem:[%s6008_s16] sm:$0xff]   ;;  %s6014_s17 = scalar_lea.vmem %s5918_s5, %s5213_s19  ;;  %s6015_s28 = scalar_lea.vmem %s5920_s7, %s5213_s19  ;;  %vm3202_vm7 = vcmask 195584   ;;  %vm3514_vm8 = vcmask 523264  }
  0xc1   : > { %4190 = vmatpush3.bf16.msra.mxu1 %v4524_v33  ;;  %4183 = vmatprep.subr.bf16.mxu0 %v4525_v34  ;;  %s4863_s4 = smov 120   ;;  %s4864_s16 = smov 112  }
  0xc2   : > { %4191 = vmatprep.subr.bf16.mxu1 %v4526_v35  ;;  %s4865_s13 = smov 104   ;;  %s4867_s12 = smov 8  }
  0xc3   : > { %s4869_s14 = smov 24   ;;  %p4058_p4 = scmp.ne.s32.totalorder %s4843_s24, 1 }
  0xc4   : > { %v993_v5 = vld [vmem:[#allocation2 + $0x10] sm:$0xff]  ;;  %v994_v9 = vld [vmem:[#allocation2 + $0x18] sm:$0xff]  ;;  %4184 = vmatpush3.bf16.msra.mxu0 %v4525_v34  ;;  %s6010_s30 = scalar_lea.vmem %s6009_s0, %s5213_s19  ;;  %vm3660_vm9 = vcmask (!%p4058_p4), 257024  }
  0xc5   : > { %v991_v4 = vld [vmem:[#allocation2] sm:$0xff]  ;;  %v992_v6 = vld [vmem:[#allocation2 + $0x8] sm:$0xff]  ;;  %v1004_v8 = vsel %vm997_vm1, %v993_v5, 0.0  ;;  %v1007_v11 = vsel %vm997_vm1, %v994_v9, 0.0  ;;  %4192 = vmatpush3.bf16.msra.mxu1 %v4526_v35  ;;  %4197 = vmatprep.subr.bf16.mxu0 %v4527_v36  ;;  %s6012_s25 = scalar_lea.vmem %s6011_s9, %s5213_s19  ;;  %s4868_s9 = smov 16  }
  0xc6   : > { %v998_v7 = vsel %vm997_vm1, %v991_v4, 0.0  ;;  %1005 = vadd.xlane.f32.xlu1 %v1004_v8  ;;  %v1001_v10 = vsel %vm997_vm1, %v992_v6, 0.0  ;;  %v3962_v51 = vld [vmem:[%s6010_s30] ss:$0 sm:$0xff]  ;;  %s6016_s30 = sld [smem:[#allocation28_spill]] }
  0xc7   : > { %999 = vadd.xlane.f32.xlu0 %v998_v7  ;;  %v3963_v57 = vld [vmem:[%s6012_s25] ss:$0 sm:$0xff]  ;;  %s6018_s25 = scalar_lea.vmem [#allocation8], %s5198_s21 }
  0xc8   : > { %v3964_v7 = vld [vmem:[%s6014_s17] ss:$0 sm:$0xff] }
  0xc9   : > { %v3969_v8 = vld [vmem:[%s6015_s28] ss:$0 sm:$0xff] }
  0xca   : > { %1008 = vadd.xlane.f32.xlu1 %v1007_v11 }
  0xcb   : > { %1002 = vadd.xlane.f32.xlu0 %v1001_v10 }
  0xcc   : > { %s6017_s29 = scalar_lea.vmem %s6016_s30, %s5213_s19 }
 0x153   : > { %v1006_v13 = vpop.xlane.xlu1 %1005 }
 0x154   : > { %v1000_v12 = vpop.xlane.xlu0 %999  ;;  %v1013_v15 = vmul.f32 0.03125, %v1006_v13 }
 0x155   : > { %v1011_v14 = vmul.f32 0.03125, %v1000_v12 }
 0x156   : > { %v1017_v17 = vsub.f32 %v993_v5, %v1013_v15  ;;  %v4528_v5 = vld [vmem:[%s6013_s27 + $0x8] sm:$0xff]   ;;  %s6019_s27 = smov %s6018_s25 }
 0x157   : > { %v1015_v16 = vsub.f32 %v991_v4, %v1011_v14  ;;  %v1009_v19 = vpop.xlane.xlu1 %1008 }
 0x158   : > { %v1003_v18 = vpop.xlane.xlu0 %1002  ;;  %v1014_v21 = vmul.f32 0.03125, %v1009_v19  ;;  %v1021_v23 = vmul.f32 %v1017_v17, %v1017_v17 }
 0x159   : > { %v1012_v20 = vmul.f32 0.03125, %v1003_v18  ;;  %v1019_v22 = vmul.f32 %v1015_v16, %v1015_v16 }
 0x15a   : > { %v1018_v25 = vsub.f32 %v994_v9, %v1014_v21  ;;  %v1029_v27 = vsel %vm997_vm1, %v1021_v23, 0.0 }
 0x15b   : > { %v1016_v24 = vsub.f32 %v992_v6, %v1012_v20  ;;  %v1023_v26 = vsel %vm997_vm1, %v1019_v22, 0.0  ;;  %v4861_v6 = vmov 0.0  }
 0x15c   : > { %1024 = vadd.xlane.f32.xlu0 %v1023_v26  ;;  %v1022_v29 = vmul.f32 %v1018_v25, %v1018_v25  ;;  %4205 = vmatprep.subr.bf16.mxu1 %v4861_v6 }
 0x15d   : > { %v1020_v28 = vmul.f32 %v1016_v24, %v1016_v24 }
 0x15e   : > { %v1032_v31 = vsel %vm997_vm1, %v1022_v29, 0.0 }
 0x15f   : > { %v1026_v30 = vsel %vm997_vm1, %v1020_v28, 0.0 }
 0x160   : > { %1030 = vadd.xlane.f32.xlu0 %v1029_v27  ;;  %1027 = vadd.xlane.f32.xlu1 %v1026_v30 }
 0x164   : > { %1033 = vadd.xlane.f32.xlu1 %v1032_v31 }
 0x1e9   : > { %v1025_v37 = vpop.xlane.xlu0 %1024 }
 0x1ea   : > { %v1035_v38 = vmul.f32 0.03125, %v1025_v37 }
 0x1ec   : > { %v1039_v39 = vadd.f32 1e-05, %v1035_v38 }
 0x1ed   : > { %v1028_v40 = vpop.xlane.xlu1 %1027  ;;  %v1031_v41 = vpop.xlane.xlu0 %1030 }
 0x1ee   : > { %4537 = vrsqrt.f32 %v1039_v39  ;;  %v1036_v42 = vmul.f32 0.03125, %v1028_v40  ;;  %v1037_v43 = vmul.f32 0.03125, %v1031_v41  ;;  %v3974_v41 = vld [vmem:[%s6017_s29] ss:$0 sm:$0xff] }
 0x1f0   : > { %v1040_v44 = vadd.f32 1e-05, %v1036_v42  ;;  %v1041_v45 = vadd.f32 1e-05, %v1037_v43 }
 0x1f1   : > { %v1034_v46 = vpop.xlane.xlu1 %1033 }
 0x1f2   : > { %4539 = vrsqrt.f32 %v1040_v44  ;;  %v1038_v47 = vmul.f32 0.03125, %v1034_v46 }
 0x1f3   : > { %4541 = vrsqrt.f32 %v1041_v45 }
 0x1f4   : > { %v1042_v48 = vadd.f32 1e-05, %v1038_v47 }
 0x1f6   : > { %4543 = vrsqrt.f32 %v1042_v48 }
 0x1f8   : > { %v4538_v49 = vpop.eup %4537 }
 0x1f9   : > { %v1047_v50 = vmul.f32 %v4538_v49, %v1015_v16 }
 0x1fb   : > { %v1057_v55 = vmul.f32 %v3962_v51, %v1047_v50 }
 0x1fc   : > { %v4540_v52 = vpop.eup %4539 }
 0x1fd   : > { %v4542_v53 = vpop.eup %4541  ;;  %v1048_v54 = vmul.f32 %v4540_v52, %v1016_v24  ;;  %v1067_v61 = vadd.f32 %v3963_v57, %v1057_v55 }
 0x1fe   : > { %v1049_v56 = vmul.f32 %v4542_v53, %v1017_v17 }
 0x1ff   : > { %v1058_v58 = vmul.f32 %v3962_v51, %v1048_v54 }
 0x200   : > { %v4544_v59 = vpop.eup %4543  ;;  %v1059_v63 = vmul.f32 %v3962_v51, %v1049_v56 }
 0x201   : > { %v1050_v60 = vmul.f32 %v4544_v59, %v1018_v25  ;;  %v1068_v62 = vadd.f32 %v3963_v57, %v1058_v58 }
 0x202   : > { %v1069_v2 = vadd.f32 %v3963_v57, %v1059_v63 }
 0x203   : > { %v1071_v0 = vpack.c.bf16 %v1068_v62, %v1067_v61  ;;  %v1060_v1 = vmul.f32 %v3962_v51, %v1050_v60 }
 0x205   : > { %4185 = vmatprep.mubr.msk.bf16.mxu0 %vm997_vm1, %v1071_v0  ;;  %4193 = vmatprep.mubr.msk.bf16.mxu1 %vm997_vm1, %v1071_v0  ;;  %v1070_v3 = vadd.f32 %v3963_v57, %v1060_v1 }
 0x207   : > { %v1072_v4 = vpack.c.bf16 %v1070_v3, %v1069_v2 }
 0x209   : > { %4186 = vmatmul.mubr.msk.bf16.vlgmr.msra.gmra.mrb[0].mxu0 %vm997_vm1, %v1072_v4  ;;  %4194 = vmatmul.mubr.msk.bf16.vlgmr.msra.gmra.mrb[0].mxu1 %vm997_vm1, %v1072_v4 }
 0x20a   : > { %4198 = vmatpush3.bf16.msra.mxu0 %v4527_v36  ;;  %4201 = vmatprep.mubr.msk.bf16.mxu0 %vm997_vm1, %v1071_v0 }
 0x20b   : > { %4199 = vmatprep.subr.bf16.mxu0 %v4528_v5  ;;  %4207 = vmatprep.mubr.msk.bf16.mxu1 %vm4862_vm2, %v4861_v6 }
 0x20e   : > { %4200 = vmatpush3.bf16.msra.mxu0 %v4528_v5 }
 0x20f   : > { %4211 = vmatprep.subr.bf16.mxu0 %v4861_v6 }
 0x211   : > { %4202 = vmatmul.mubr.msk.bf16.vlgmr.msra.gmra.mrb[4].mxu0 %vm997_vm1, %v1072_v4 }
 0x212   : > { %4213 = vmatprep.mubr.msk.bf16.mxu0 %vm4862_vm2, %v4861_v6 }
 0x2dc   : > { %v4187_v9 = vpop.f32.mrb[0].mxu0  ;;  %v4195_v10 = vpop.f32.mrb[0].mxu1 }
 0x2dd   : > { %v1136_v11 = vpop.f32.mrb[1].mxu0  ;;  %v1210_v12 = vpop.f32.mrb[1].mxu1  ;;  %v1219_v19 = vadd.f32 %v4195_v10, %v3969_v8  ;;  %v1145_v25 = vadd.f32 %v4187_v9, %v3964_v7 }
 0x2de   : > { %v1137_v13 = vadd.f32 %v3964_v7, %v1136_v11  ;;  %v1211_v14 = vadd.f32 %v3969_v8, %v1210_v12  ;;  %v4188_v15 = vpop.f32.mrb[2].mxu0  ;;  %v4196_v16 = vpop.f32.mrb[2].mxu1 }
 0x2df   : > { %v1139_v17 = vpop.f32.mrb[3].mxu0  ;;  %v1213_v18 = vpop.f32.mrb[3].mxu1  ;;  %v4077_v26 = vpack.c.bf16 %v1219_v19, %v1219_v19  ;;  %v1222_v27 = vadd.f32 %v4196_v16, %v3969_v8  ;;  %v4073_v34 = vpack.c.bf16 %v1145_v25, %v1145_v25  ;;  %v1148_v38 = vadd.f32 %v4188_v15, %v3964_v7 }
 0x2e0   : > { %v4071_v20 = vpack.c.bf16 %v1137_v13, %v1137_v13  ;;  %v4075_v21 = vpack.c.bf16 %v1211_v14, %v1211_v14  ;;  %v1214_v22 = vadd.f32 %v3969_v8, %v1213_v18  ;;  %v1140_v31 = vadd.f32 %v3964_v7, %v1139_v17 }
 0x2e1   : > { %v4078_v35 = vpack.c.bf16 %v1222_v27, %v1222_v27  ;;  %v1538_v37 = vsel %vm1441_vm3, %v4077_v26, 0  ;;  %v4074_v40 = vpack.c.bf16 %v1148_v38, %v1148_v38  ;;  %v1301_v25 = vlaneseq }
 0x2e2   : > { %v4076_v23 = vpack.c.bf16 %v1214_v22, %v1214_v22  ;;  %1383 = vrot.lane.b32.xlu0 %v4075_v21, %s4863_s4  ;;  %1349 = vrot.lane.b32.xlu1 %v4071_v20, %s4863_s4  ;;  %v1446_v24 = vsel %vm1441_vm3, %v4075_v21, 0  ;;  %v4072_v36 = vpack.c.bf16 %v1140_v31, %v1140_v31  ;;  %v3980_v31 = vld [vmem:[#allocation3 + $0x1] ss:$0 sm:$0xff] }
 0x2e3   : > { %4206 = vmatpush3.bf16.xpose.msra.mxu1 %v1446_v24  ;;  %v1584_v39 = vsel %vm1441_vm3, %v4078_v35, 0  ;;  %v1304_v27 = vand.u32 127, %v1301_v25 }
 0x2e4   : > { %v4203_v28 = vpop.f32.mrb[4].mxu0  ;;  %v1492_v29 = vsel %vm1441_vm3, %v4076_v23, 0  ;;  %4217 = vmatprep.subr.bf16.mxu1 %v4861_v6 }
 0x2e5   : > { %v1284_v30 = vpop.f32.mrb[5].mxu0  ;;  %4212 = vmatpush3.bf16.xpose.msra.mxu0 %v1492_v29  ;;  %v1293_v42 = vadd.f32 %v4203_v28, %v3974_v41  ;;  %v4866_v28 = vmov -1e+30  }
 0x2e6   : > { %1387 = vrot.lane.b32.xlu0 %v4077_v26, %s4863_s4  ;;  %v4204_v32 = vpop.f32.mrb[6].mxu0  ;;  %1385 = vrot.lane.b32.xlu1 %v4076_v23, %s4863_s4  ;;  %v1285_v44 = vadd.f32 %v3974_v41, %v1284_v30  ;;  %v3979_v30 = vld [vmem:[#allocation3] ss:$0 sm:$0xff] }
 0x2e7   : > { %v1287_v33 = vpop.f32.mrb[7].mxu0  ;;  %4223 = vmatprep.subr.bf16.mxu0 %v4861_v6  ;;  %v5380_v43 = vpack.c.bf16 %v1293_v42, %v1293_v42  ;;  %v1296_v46 = vadd.f32 %v4204_v32, %v3974_v41 }
 0x2e8   : > { %v5385_v45 = vpack.c.bf16 %v1285_v44, %v1285_v44  ;;  %v1288_v48 = vadd.f32 %v3974_v41, %v1287_v33  ;;  %v3981_v41 = vld [vmem:[#allocation3 + $0x2] ss:$0 sm:$0xff] }
 0x2e9   : > { %v5390_v47 = vpack.c.bf16 %v1296_v46, %v1296_v46 }
 0x2ea   : > { %1353 = vrot.lane.b32.xlu0 %v4073_v34, %s4863_s4  ;;  %1389 = vrot.lane.b32.xlu1 %v4078_v35, %s4863_s4  ;;  %v5394_v49 = vpack.c.bf16 %v1288_v48, %v1288_v48  ;;  %v2391_v22 = vsel %vm2389_vm4, %v5385_v45, 0 }
 0x2eb   : > { %4208 = vmatmul.mubr.msk.bf16.vlgmr.msra.gmra.mrb[4].mxu1 %vm1441_vm3, %v4071_v20 }
 0x2ec   : > { %4218 = vmatpush3.bf16.xpose.msra.mxu1 %v1538_v37  ;;  %4214 = vmatmul.mubr.msk.bf16.vlgmr.msra.gmra.mrb[8].mxu0 %vm1441_vm3, %v4072_v36  ;;  %v2437_v24 = vsel %vm2389_vm4, %v5394_v49, 0 }
 0x2ed   : > { %4224 = vmatpush3.bf16.xpose.msra.mxu0 %v1584_v39  ;;  %4219 = vmatprep.mubr.msk.bf16.mxu1 %vm4862_vm2, %v4861_v6 }
 0x2ee   : > { %1391 = vrot.lane.b32.xlu0 %v4075_v21, %s4864_s16  ;;  %1351 = vrot.lane.b32.xlu1 %v4072_v36, %s4863_s4 }
 0x2ef   : > { %4225 = vmatprep.mubr.msk.bf16.mxu0 %vm4862_vm2, %v4861_v6  ;;  %4229 = vmatprep.subr.bf16.mxu1 %v4861_v6 }
 0x2f0   : > { %4235 = vmatprep.subr.bf16.mxu0 %v4861_v6 }
 0x2f2   : > { %1357 = vrot.lane.b32.xlu0 %v4071_v20, %s4864_s16  ;;  %1355 = vrot.lane.b32.xlu1 %v4074_v40, %s4863_s4 }
 0x2f3   : > { %4220 = vmatmul.mubr.msk.bf16.vlgmr.msra.gmra.mrb[8].mxu1 %vm1441_vm3, %v4073_v34 }
 0x2f4   : > { %4226 = vmatmul.mubr.msk.bf16.vlgmr.msra.gmra.mrb[12].mxu0 %vm1441_vm3, %v4074_v40  ;;  %4231 = vmatprep.mubr.msk.bf16.mxu1 %vm4862_vm2, %v4861_v6 }
 0x2f5   : > { %4237 = vmatprep.mubr.msk.bf16.mxu0 %vm4862_vm2, %v4861_v6 }
 0x2f6   : > { %1395 = vrot.lane.b32.xlu0 %v4077_v26, %s4864_s16  ;;  %1393 = vrot.lane.b32.xlu1 %v4076_v23, %s4864_s16 }
 0x2fa   : > { %1361 = vrot.lane.b32.xlu0 %v4073_v34, %s4864_s16  ;;  %1397 = vrot.lane.b32.xlu1 %v4078_v35, %s4864_s16 }
 0x2fe   : > { %1399 = vrot.lane.b32.xlu0 %v4075_v21, %s4865_s13  ;;  %1359 = vrot.lane.b32.xlu1 %v4072_v36, %s4864_s16 }
 0x302   : > { %1365 = vrot.lane.b32.xlu0 %v4071_v20, %s4865_s13  ;;  %1363 = vrot.lane.b32.xlu1 %v4074_v40, %s4864_s16 }
 0x306   : > { %1403 = vrot.lane.b32.xlu0 %v4077_v26, %s4865_s13  ;;  %1401 = vrot.lane.b32.xlu1 %v4076_v23, %s4865_s13  ;;  %v1302_v26 = vshrl.u32 %v1301_v25, 7 }
 0x308   : > { %vm1305_vm5 = vcmp.le.s32.totalorder %v1304_v27, %v1302_v26 }
 0x309   : > { %v1306_v29 = vsel %vm1305_vm5, 0.0, %v4866_v28 }
 0x30a   : > { %1369 = vrot.lane.b32.xlu0 %v4073_v34, %s4865_s13  ;;  %1367 = vrot.lane.b32.xlu1 %v4072_v36, %s4865_s13  ;;  %v5464_v32 = vadd.f32 %v3979_v30, %v1306_v29  ;;  %v5466_v33 = vadd.f32 %v3980_v31, %v1306_v29 }
 0x30e   : > { %1421 = vrot.lane.b32.xlu0 %v5380_v43, %s4863_s4  ;;  %1405 = vrot.lane.b32.xlu1 %v4078_v35, %s4865_s13 }
 0x312   : > { %1417 = vrot.lane.b32.xlu0 %v5385_v45, %s4863_s4  ;;  %1371 = vrot.lane.b32.xlu1 %v4074_v40, %s4865_s13 }
 0x316   : > { %1423 = vrot.lane.b32.xlu1 %v5390_v47, %s4863_s4 }
 0x31a   : > { %1419 = vrot.lane.b32.xlu1 %v5394_v49, %s4863_s4 }
 0x354   : > { %v1384_v50 = vpop.permute.xlu0 %1383  ;;  %v1350_v51 = vpop.permute.xlu1 %1349 }
 0x355   : > { %v1630_v52 = vsel %vm1441_vm3, %v1384_v50, 0 }
 0x356   : > { %4230 = vmatpush3.bf16.xpose.msra.mxu1 %v1630_v52  ;;  %v5478_v52 = vadd.f32 %v3981_v41, %v1306_v29 }
 0x357   : > { %4241 = vmatprep.subr.bf16.mxu1 %v4861_v6 }
 0x358   : > { %v1388_v53 = vpop.permute.xlu0 %1387  ;;  %v1386_v54 = vpop.permute.xlu1 %1385 }
 0x359   : > { %v1676_v55 = vsel %vm1441_vm3, %v1386_v54, 0  ;;  %v1722_v58 = vsel %vm1441_vm3, %v1388_v53, 0 }
 0x35a   : > { %4236 = vmatpush3.bf16.xpose.msra.mxu0 %v1676_v55 }
 0x35b   : > { %4247 = vmatprep.subr.bf16.mxu0 %v4861_v6 }
 0x35c   : > { %v1354_v56 = vpop.permute.xlu0 %1353  ;;  %v1390_v57 = vpop.permute.xlu1 %1389 }
 0x35d   : > { %4232 = vmatmul.mubr.msk.bf16.vlgmr.msra.gmra.mrb[12].mxu1 %vm1441_vm3, %v1350_v51  ;;  %v1768_v61 = vsel %vm1441_vm3, %v1390_v57, 0  ;;  %v3982_v51 = vld [vmem:[#allocation3 + $0x3] ss:$0 sm:$0xff] }
 0x35e   : > { %4242 = vmatpush3.bf16.xpose.msra.mxu1 %v1722_v58  ;;  %4243 = vmatprep.mubr.msk.bf16.mxu1 %vm4862_vm2, %v4861_v6  ;;  %v5480_v53 = vadd.f32 %v3982_v51, %v1306_v29 }
 0x35f   : > { %4253 = vmatprep.subr.bf16.mxu1 %v4861_v6 }
 0x360   : > { %v1392_v59 = vpop.permute.xlu0 %1391  ;;  %v1352_v60 = vpop.permute.xlu1 %1351 }
 0x361   : > { %4238 = vmatmul.mubr.msk.bf16.vlgmr.msra.gmra.mrb[16].mxu0 %vm1441_vm3, %v1352_v60  ;;  %v1814_v0 = vsel %vm1441_vm3, %v1392_v59, 0 }
 0x362   : > { %4248 = vmatpush3.bf16.xpose.msra.mxu0 %v1768_v61  ;;  %4249 = vmatprep.mubr.msk.bf16.mxu0 %vm4862_vm2, %v4861_v6 }
 0x363   : > { %4259 = vmatprep.subr.bf16.mxu0 %v4861_v6 }
 0x364   : > { %v1358_v62 = vpop.permute.xlu0 %1357  ;;  %v1356_v63 = vpop.permute.xlu1 %1355 }
 0x365   : > { %4244 = vmatmul.mubr.msk.bf16.vlgmr.msra.gmra.mrb[16].mxu1 %vm1441_vm3, %v1354_v56 }
 0x366   : > { %4254 = vmatpush3.bf16.xpose.msra.mxu1 %v1814_v0  ;;  %4255 = vmatprep.mubr.msk.bf16.mxu1 %vm4862_vm2, %v4861_v6 }
 0x367   : > { %4265 = vmatprep.subr.bf16.mxu1 %v4861_v6 }
 0x368   : > { %v1396_v1 = vpop.permute.xlu0 %1395  ;;  %v1394_v2 = vpop.permute.xlu1 %1393 }
 0x369   : > { %v1860_v3 = vsel %vm1441_vm3, %v1394_v2, 0  ;;  %4250 = vmatmul.mubr.msk.bf16.vlgmr.msra.gmra.mrb[20].mxu0 %vm1441_vm3, %v1356_v63  ;;  %v1906_v7 = vsel %vm1441_vm3, %v1396_v1, 0 }
 0x36a   : > { %4260 = vmatpush3.bf16.xpose.msra.mxu0 %v1860_v3  ;;  %4261 = vmatprep.mubr.msk.bf16.mxu0 %vm4862_vm2, %v4861_v6 }
 0x36b   : > { %4271 = vmatprep.subr.bf16.mxu0 %v4861_v6 }
 0x36c   : > { %v1362_v4 = vpop.permute.xlu0 %1361  ;;  %v1398_v5 = vpop.permute.xlu1 %1397 }
 0x36d   : > { %4256 = vmatmul.mubr.msk.bf16.vlgmr.msra.gmra.mrb[20].mxu1 %vm1441_vm3, %v1358_v62  ;;  %v1952_v10 = vsel %vm1441_vm3, %v1398_v5, 0 }
 0x36e   : > { %4266 = vmatpush3.bf16.xpose.msra.mxu1 %v1906_v7  ;;  %4267 = vmatprep.mubr.msk.bf16.mxu1 %vm4862_vm2, %v4861_v6 }
 0x36f   : > { %4277 = vmatprep.subr.bf16.mxu1 %v4861_v6 }
 0x370   : > { %v1400_v8 = vpop.permute.xlu0 %1399  ;;  %v1360_v9 = vpop.permute.xlu1 %1359 }
 0x371   : > { %4262 = vmatmul.mubr.msk.bf16.vlgmr.msra.gmra.mrb[24].mxu0 %vm1441_vm3, %v1360_v9  ;;  %v1998_v13 = vsel %vm1441_vm3, %v1400_v8, 0 }
 0x372   : > { %4272 = vmatpush3.bf16.xpose.msra.mxu0 %v1952_v10  ;;  %4273 = vmatprep.mubr.msk.bf16.mxu0 %vm4862_vm2, %v4861_v6 }
 0x373   : > { %4283 = vmatprep.subr.bf16.mxu0 %v4861_v6 }
 0x374   : > { %v1366_v11 = vpop.permute.xlu0 %1365  ;;  %v1364_v12 = vpop.permute.xlu1 %1363 }
 0x375   : > { %4268 = vmatmul.mubr.msk.bf16.vlgmr.msra.gmra.mrb[24].mxu1 %vm1441_vm3, %v1362_v4 }
 0x376   : > { %4278 = vmatpush3.bf16.xpose.msra.mxu1 %v1998_v13  ;;  %4279 = vmatprep.mubr.msk.bf16.mxu1 %vm4862_vm2, %v4861_v6 }
 0x377   : > { %4289 = vmatprep.subr.bf16.mxu1 %v4861_v6 }
 0x378   : > { %v1402_v14 = vpop.permute.xlu1 %1401  ;;  %v1404_v16 = vpop.permute.xlu0 %1403 }
 0x379   : > { %v2044_v15 = vsel %vm1441_vm3, %v1402_v14, 0  ;;  %4274 = vmatmul.mubr.msk.bf16.vlgmr.msra.gmra.mrb[28].mxu0 %vm1441_vm3, %v1364_v12  ;;  %v2090_v18 = vsel %vm1441_vm3, %v1404_v16, 0 }
 0x37a   : > { %4284 = vmatpush3.bf16.xpose.msra.mxu0 %v2044_v15  ;;  %4285 = vmatprep.mubr.msk.bf16.mxu0 %vm4862_vm2, %v4861_v6 }
 0x37b   : > { %4295 = vmatprep.subr.bf16.mxu0 %v4861_v6 }
 0x37c   : > { %v1368_v17 = vpop.permute.xlu1 %1367  ;;  %v1370_v21 = vpop.permute.xlu0 %1369 }
 0x37d   : > { %4280 = vmatmul.mubr.msk.bf16.vlgmr.msra.gmra.mrb[28].mxu1 %vm1441_vm3, %v1366_v11 }
 0x37e   : > { %4290 = vmatpush3.bf16.xpose.msra.mxu1 %v2090_v18  ;;  %4291 = vmatprep.mubr.msk.bf16.mxu1 %vm4862_vm2, %v4861_v6 }
 0x37f   : > { %4301 = vmatprep.subr.bf16.mxu1 %v4861_v6 }
 0x380   : > { %v1406_v19 = vpop.permute.xlu1 %1405 }
 0x381   : > { %v2136_v20 = vsel %vm1441_vm3, %v1406_v19, 0  ;;  %4286 = vmatmul.mubr.msk.bf16.vlgmr.msra.gmra.mrb[32].mxu0 %vm1441_vm3, %v1368_v17 }
 0x382   : > { %4296 = vmatpush3.bf16.xpose.msra.mxu0 %v2136_v20  ;;  %4297 = vmatprep.mubr.msk.bf16.mxu0 %vm4862_vm2, %v4861_v6 }
 0x383   : > { %4307 = vmatprep.subr.bf16.mxu0 %v4861_v6 }
 0x384   : > { %v1372_v23 = vpop.permute.xlu1 %1371 }
 0x385   : > { %4292 = vmatmul.mubr.msk.bf16.vlgmr.msra.gmra.mrb[32].mxu1 %vm1441_vm3, %v1370_v21 }
 0x386   : > { %4302 = vmatpush3.bf16.msra.mxu1 %v2391_v22  ;;  %4303 = vmatprep.mubr.msk.bf16.mxu1 %vm4862_vm2, %v4861_v6 }
 0x387   : > { %4313 = vmatprep.subr.bf16.mxu1 %v4861_v6 }
 0x389   : > { %4298 = vmatmul.mubr.msk.bf16.vlgmr.msra.gmra.mrb[36].mxu0 %vm1441_vm3, %v1372_v23 }
 0x38a   : > { %4308 = vmatpush3.bf16.msra.mxu0 %v2437_v24  ;;  %4309 = vmatprep.mubr.msk.bf16.mxu0 %vm4862_vm2, %v4861_v6 }
 0x38b   : > { %4319 = vmatprep.subr.bf16.mxu0 %v4861_v6 }
 0x3be   : > { %v1482_v34 = vpop.f32.mrb[4].mxu1 }
 0x3bf   : > { %v5469_v35 = vadd.f32 %v1482_v34, %v5464_v32  ;;  %v4209_v36 = vpop.f32.mrb[5].mxu1  ;;  %v1528_v37 = vpop.f32.mrb[8].mxu0 }
 0x3c0   : > { %v1485_v38 = vpop.f32.mrb[6].mxu1  ;;  %v5472_v39 = vadd.f32 %v1528_v37, %v5466_v33  ;;  %v4215_v40 = vpop.f32.mrb[9].mxu0 }
 0x3c1   : > { %v4210_v42 = vpop.f32.mrb[7].mxu1  ;;  %v1531_v44 = vpop.f32.mrb[10].mxu0  ;;  %v2194_v46 = vsel %vm1441_vm3, %v5469_v35, -inf }
 0x3c2   : > { %2195 = vmax.xlane.f32.xlu0 %v2194_v46  ;;  %v4216_v48 = vpop.f32.mrb[11].mxu0  ;;  %v2197_v50 = vsel %vm1441_vm3, %v5472_v39, -inf }
 0x3c3   : > { %2198 = vmax.xlane.f32.xlu1 %v2197_v50 }
 0x3c6   : > { %v1574_v54 = vpop.f32.mrb[8].mxu1 }
 0x3c7   : > { %v5483_v55 = vadd.f32 %v1574_v54, %v5478_v52  ;;  %v4221_v56 = vpop.f32.mrb[9].mxu1  ;;  %v1620_v57 = vpop.f32.mrb[12].mxu0 }
 0x3c8   : > { %v1577_v58 = vpop.f32.mrb[10].mxu1  ;;  %v4227_v59 = vpop.f32.mrb[13].mxu0  ;;  %v5486_v60 = vadd.f32 %v1620_v57, %v5480_v53 }
 0x3c9   : > { %v4222_v61 = vpop.f32.mrb[11].mxu1  ;;  %v1623_v62 = vpop.f32.mrb[14].mxu0  ;;  %v2200_v63 = vsel %vm1441_vm3, %v5483_v55, -inf }
 0x3ca   : > { %2201 = vmax.xlane.f32.xlu0 %v2200_v63  ;;  %v4228_v0 = vpop.f32.mrb[15].mxu0  ;;  %v2203_v1 = vsel %vm1441_vm3, %v5486_v60, -inf }
 0x3ce   : > { %2204 = vmax.xlane.f32.xlu0 %v2203_v1 }
 0x430   : > { %v1666_v2 = vpop.f32.mrb[12].mxu1 }
 0x431   : > { %v5493_v3 = vadd.f32 %v1666_v2, %v5464_v32  ;;  %v4233_v4 = vpop.f32.mrb[13].mxu1 }
 0x432   : > { %v1669_v5 = vpop.f32.mrb[14].mxu1 }
 0x433   : > { %v4234_v7 = vpop.f32.mrb[15].mxu1  ;;  %v2206_v8 = vsel %vm1441_vm3, %v5493_v3, -inf }
 0x434   : > { %v1712_v9 = vpop.f32.mrb[16].mxu0  ;;  %2207 = vmax.xlane.f32.xlu0 %v2206_v8 }
 0x435   : > { %v5498_v10 = vadd.f32 %v1712_v9, %v5466_v33  ;;  %v4239_v11 = vpop.f32.mrb[17].mxu0 }
 0x436   : > { %v1715_v12 = vpop.f32.mrb[18].mxu0 }
 0x437   : > { %v4240_v13 = vpop.f32.mrb[19].mxu0  ;;  %v2209_v14 = vsel %vm1441_vm3, %v5498_v10, -inf }
 0x438   : > { %2210 = vmax.xlane.f32.xlu1 %v2209_v14  ;;  %v1758_v15 = vpop.f32.mrb[16].mxu1 }
 0x439   : > { %v5503_v16 = vadd.f32 %v1758_v15, %v5478_v52  ;;  %v4245_v17 = vpop.f32.mrb[17].mxu1 }
 0x43a   : > { %v1761_v18 = vpop.f32.mrb[18].mxu1 }
 0x43b   : > { %v4246_v19 = vpop.f32.mrb[19].mxu1  ;;  %v2212_v20 = vsel %vm1441_vm3, %v5503_v16, -inf }
 0x43c   : > { %v1804_v21 = vpop.f32.mrb[20].mxu0  ;;  %2213 = vmax.xlane.f32.xlu0 %v2212_v20 }
 0x43d   : > { %v5508_v22 = vadd.f32 %v1804_v21, %v5480_v53  ;;  %v4251_v23 = vpop.f32.mrb[21].mxu0 }
 0x43e   : > { %v1807_v24 = vpop.f32.mrb[22].mxu0 }
 0x43f   : > { %v4252_v25 = vpop.f32.mrb[23].mxu0  ;;  %v2215_v26 = vsel %vm1441_vm3, %v5508_v22, -inf  ;;  %v5551_v24 = vpop.permute.xlu0 %1421 }
 0x440   : > { %2216 = vmax.xlane.f32.xlu1 %v2215_v26  ;;  %v1850_v27 = vpop.f32.mrb[20].mxu1  ;;  %v5559_v25 = vpop.permute.xlu1 %1423 }
 0x441   : > { %v5513_v28 = vadd.f32 %v1850_v27, %v5464_v32  ;;  %v4257_v29 = vpop.f32.mrb[21].mxu1 }
 0x442   : > { %v1853_v30 = vpop.f32.mrb[22].mxu1 }
 0x443   : > { %v4258_v31 = vpop.f32.mrb[23].mxu1  ;;  %v2218_v34 = vsel %vm1441_vm3, %v5513_v28, -inf }
 0x444   : > { %v1896_v36 = vpop.f32.mrb[24].mxu0  ;;  %2219 = vmax.xlane.f32.xlu0 %v2218_v34  ;;  %v5562_v29 = vpop.permute.xlu1 %1419 }
 0x445   : > { %v5518_v37 = vadd.f32 %v1896_v36, %v5466_v33  ;;  %v4263_v38 = vpop.f32.mrb[25].mxu0 }
 0x446   : > { %v1899_v40 = vpop.f32.mrb[26].mxu0 }
 0x447   : > { %v4264_v41 = vpop.f32.mrb[27].mxu0  ;;  %v2221_v42 = vsel %vm1441_vm3, %v5518_v37, -inf }
 0x448   : > { %2222 = vmax.xlane.f32.xlu1 %v2221_v42  ;;  %v1942_v44 = vpop.f32.mrb[24].mxu1 }
 0x449   : > { %v5523_v46 = vadd.f32 %v1942_v44, %v5478_v52  ;;  %v4269_v48 = vpop.f32.mrb[25].mxu1 }
 0x44a   : > { %v1945_v50 = vpop.f32.mrb[26].mxu1 }
 0x44b   : > { %v4270_v51 = vpop.f32.mrb[27].mxu1  ;;  %v2224_v54 = vsel %vm1441_vm3, %v5523_v46, -inf }
 0x44c   : > { %v1988_v56 = vpop.f32.mrb[28].mxu0  ;;  %2225 = vmax.xlane.f32.xlu0 %v2224_v54 }
 0x44d   : > { %v5528_v57 = vadd.f32 %v1988_v56, %v5480_v53  ;;  %v4275_v58 = vpop.f32.mrb[29].mxu0 }
 0x44e   : > { %v1991_v59 = vpop.f32.mrb[30].mxu0 }
 0x44f   : > { %v4276_v61 = vpop.f32.mrb[31].mxu0  ;;  %v2227_v62 = vsel %vm1441_vm3, %v5528_v57, -inf }
 0x450   : > { %2228 = vmax.xlane.f32.xlu1 %v2227_v62  ;;  %v2034_v63 = vpop.f32.mrb[28].mxu1  ;;  %v2199_v36 = vpop.xlane.xlu1 %2198 }
 0x451   : > { %v5533_v0 = vadd.f32 %v2034_v63, %v5464_v32  ;;  %v4281_v1 = vpop.f32.mrb[29].mxu1  ;;  %v2243_v38 = vsub.f32 %v5472_v39, %v2199_v36 }
 0x452   : > { %v2037_v2 = vpop.f32.mrb[30].mxu1 }
 0x453   : > { %v4282_v4 = vpop.f32.mrb[31].mxu1  ;;  %v2230_v5 = vsel %vm1441_vm3, %v5533_v0, -inf  ;;  %v2260_v42 = vmul.f32 1.442695, %v2243_v38 }
 0x454   : > { %v2080_v7 = vpop.f32.mrb[32].mxu0  ;;  %2231 = vmax.xlane.f32.xlu0 %v2230_v5 }
 0x455   : > { %v5538_v8 = vadd.f32 %v2080_v7, %v5466_v33  ;;  %v4287_v9 = vpop.f32.mrb[33].mxu0 }
 0x456   : > { %v2083_v11 = vpop.f32.mrb[34].mxu0 }
 0x457   : > { %v4288_v12 = vpop.f32.mrb[35].mxu0  ;;  %v2233_v13 = vsel %vm1441_vm3, %v5538_v8, -inf }
 0x458   : > { %2234 = vmax.xlane.f32.xlu1 %v2233_v13  ;;  %v2126_v32 = vpop.f32.mrb[32].mxu1 }
 0x459   : > { %v5543_v14 = vadd.f32 %v2126_v32, %v5478_v52  ;;  %v4293_v15 = vpop.f32.mrb[33].mxu1  ;;  %v5557_v52 = vpop.permute.xlu0 %1417 }
 0x45a   : > { %v2129_v17 = vpop.f32.mrb[34].mxu1 }
 0x45b   : > { %v4294_v18 = vpop.f32.mrb[35].mxu1  ;;  %v2236_v19 = vsel %vm1441_vm3, %v5543_v14, -inf }
 0x45c   : > { %v2172_v20 = vpop.f32.mrb[36].mxu0  ;;  %2237 = vmax.xlane.f32.xlu0 %v2236_v19 }
 0x45d   : > { %v4299_v33 = vpop.f32.mrb[37].mxu0  ;;  %v2196_v26 = vpop.xlane.xlu0 %2195 }
 0x45e   : > { %v2175_v21 = vpop.f32.mrb[38].mxu0  ;;  %v2242_v27 = vsub.f32 %v5469_v35, %v2196_v26  ;;  %v5570_v35 = vadd.f32 %v2172_v20, %v5480_v53 }
 0x45f   : > { %v4300_v23 = vpop.f32.mrb[39].mxu0 }
 0x460   : > { %v2258_v31 = vmul.f32 1.442695, %v2242_v27  ;;  %v2239_v39 = vsel %vm1441_vm3, %v5570_v35, -inf }
 0x461   : > { %v2202_v30 = vpop.xlane.xlu0 %2201 }
 0x462   : > { %v2244_v34 = vsub.f32 %v5483_v55, %v2202_v30  ;;  %4545 = vpow2.f32 %v2258_v31 }
 0x464   : > { %v2262_v40 = vmul.f32 1.442695, %v2244_v34 }
 0x465   : > { %v2205_v41 = vpop.xlane.xlu0 %2204 }
 0x466   : > { %4547 = vpow2.f32 %v2262_v40  ;;  %v2245_v44 = vsub.f32 %v5486_v60, %v2205_v41 }
 0x467   : > { %4549 = vpow2.f32 %v2260_v42 }
 0x468   : > { %v2264_v48 = vmul.f32 1.442695, %v2245_v44 }
 0x469   : > { %1427 = vrot.lane.b32.xlu1 %v5394_v49, %s4864_s16 }
 0x46a   : > { %4551 = vpow2.f32 %v2264_v48 }
 0x46c   : > { %v5567_v50 = vpop.eup %4545 }
 0x46d   : > { %1429 = vrot.lane.b32.xlu1 %v5380_v43, %s4864_s16  ;;  %v2290_v55 = vsel %vm1441_vm3, %v5567_v50, 0.0 }
 0x470   : > { %v5574_v51 = vpop.eup %4547 }
 0x471   : > { %1431 = vrot.lane.b32.xlu1 %v5390_v47, %s4864_s16  ;;  %v2296_v60 = vsel %vm1441_vm3, %v5574_v51, 0.0  ;;  %v5580_v54 = vpop.eup %4549 }
 0x472   : > { %1425 = vrot.lane.b32.xlu0 %v5385_v45, %s4864_s16  ;;  %v2293_v53 = vsel %vm1441_vm3, %v5580_v54, 0.0 }
 0x474   : > { %v5584_v56 = vpop.eup %4551 }
 0x475   : > { %v2299_v58 = vsel %vm1441_vm3, %v5584_v56, 0.0 }
 0x491   : > { %2291 = vadd.xlane.f32.xlu0 %v2290_v55 }
 0x495   : > { %2240 = vmax.xlane.f32.xlu1 %v2239_v39  ;;  %2297 = vadd.xlane.f32.xlu0 %v2296_v60 }
 0x499   : > { %2294 = vadd.xlane.f32.xlu1 %v2293_v53 }
 0x49d   : > { %2300 = vadd.xlane.f32.xlu1 %v2299_v58 }
 0x4c1   : > { %v2208_v59 = vpop.xlane.xlu0 %2207 }
 0x4c2   : > { %v2246_v61 = vsub.f32 %v5493_v3, %v2208_v59 }
 0x4c4   : > { %v2266_v62 = vmul.f32 1.442695, %v2246_v61 }
 0x4c5   : > { %v2211_v63 = vpop.xlane.xlu1 %2210 }
 0x4c6   : > { %4553 = vpow2.f32 %v2266_v62  ;;  %v2247_v1 = vsub.f32 %v5498_v10, %v2211_v63 }
 0x4c8   : > { %v2268_v2 = vmul.f32 1.442695, %v2247_v1 }
 0x4c9   : > { %v2214_v4 = vpop.xlane.xlu0 %2213 }
 0x4ca   : > { %4555 = vpow2.f32 %v2268_v2  ;;  %v2248_v5 = vsub.f32 %v5503_v16, %v2214_v4 }
 0x4cc   : > { %v2270_v7 = vmul.f32 1.442695, %v2248_v5 }
 0x4cd   : > { %v2217_v9 = vpop.xlane.xlu1 %2216 }
 0x4ce   : > { %4557 = vpow2.f32 %v2270_v7  ;;  %v2249_v11 = vsub.f32 %v5508_v22, %v2217_v9 }
 0x4d0   : > { %v5592_v12 = vpop.eup %4553  ;;  %v2272_v13 = vmul.f32 1.442695, %v2249_v11 }
 0x4d1   : > { %v2220_v32 = vpop.xlane.xlu0 %2219  ;;  %v2302_v3 = vsel %vm1441_vm3, %v5592_v12, 0.0 }
 0x4d2   : > { %4559 = vpow2.f32 %v2272_v13  ;;  %v2250_v10 = vsub.f32 %v5513_v28, %v2220_v32  ;;  %2303 = vadd.xlane.f32.xlu0 %v2302_v3 }
 0x4d4   : > { %v5597_v15 = vpop.eup %4555  ;;  %v2274_v17 = vmul.f32 1.442695, %v2250_v10 }
 0x4d5   : > { %v2223_v16 = vpop.xlane.xlu1 %2222  ;;  %v2305_v18 = vsel %vm1441_vm3, %v5597_v15, 0.0 }
 0x4d6   : > { %4561 = vpow2.f32 %v2274_v17  ;;  %v2251_v22 = vsub.f32 %v5518_v37, %v2223_v16  ;;  %2306 = vadd.xlane.f32.xlu1 %v2305_v18 }
 0x4d8   : > { %v5602_v19 = vpop.eup %4557  ;;  %v2276_v20 = vmul.f32 1.442695, %v2251_v22  ;;  %v2483_v22 = vsel %vm2389_vm4, %v5380_v43, 0 }
 0x4d9   : > { %v2226_v33 = vpop.xlane.xlu0 %2225  ;;  %v2308_v21 = vsel %vm1441_vm3, %v5602_v19, 0.0 }
 0x4da   : > { %4563 = vpow2.f32 %v2276_v20  ;;  %v2252_v28 = vsub.f32 %v5523_v46, %v2226_v33  ;;  %2309 = vadd.xlane.f32.xlu0 %v2308_v21 }
 0x4dc   : > { %v5607_v23 = vpop.eup %4559  ;;  %v2278_v26 = vmul.f32 1.442695, %v2252_v28 }
 0x4dd   : > { %v2311_v27 = vsel %vm1441_vm3, %v5607_v23, 0.0  ;;  %v2229_v38 = vpop.xlane.xlu1 %2228 }
 0x4de   : > { %4565 = vpow2.f32 %v2278_v26  ;;  %2312 = vadd.xlane.f32.xlu1 %v2311_v27  ;;  %v2253_v40 = vsub.f32 %v5528_v57, %v2229_v38 }
 0x4e0   : > { %v5611_v37 = vpop.eup %4561  ;;  %v2280_v48 = vmul.f32 1.442695, %v2253_v40 }
 0x4e1   : > { %v2314_v30 = vsel %vm1441_vm3, %v5611_v37, 0.0  ;;  %v2232_v41 = vpop.xlane.xlu0 %2231 }
 0x4e2   : > { %2315 = vadd.xlane.f32.xlu0 %v2314_v30  ;;  %v2254_v44 = vsub.f32 %v5533_v0, %v2232_v41  ;;  %4567 = vpow2.f32 %v2280_v48  ;;  %v2529_v30 = vsel %vm2389_vm4, %v5390_v47, 0 }
 0x4e4   : > { %v5615_v31 = vpop.eup %4563  ;;  %v2282_v60 = vmul.f32 1.442695, %v2254_v44  ;;  %v2667_v44 = vsel %vm2389_vm4, %v5551_v24, 0 }
 0x4e5   : > { %v2317_v46 = vsel %vm1441_vm3, %v5615_v31, 0.0  ;;  %v2235_v42 = vpop.xlane.xlu1 %2234 }
 0x4e6   : > { %2318 = vadd.xlane.f32.xlu1 %v2317_v46  ;;  %v2255_v55 = vsub.f32 %v5538_v8, %v2235_v42  ;;  %4569 = vpow2.f32 %v2282_v60  ;;  %v2621_v46 = vsel %vm2389_vm4, %v5562_v29, 0 }
 0x4e8   : > { %v5619_v34 = vpop.eup %4565  ;;  %v2284_v53 = vmul.f32 1.442695, %v2255_v55 }
 0x4e9   : > { %v2320_v36 = vsel %vm1441_vm3, %v5619_v34, 0.0  ;;  %v2238_v39 = vpop.xlane.xlu0 %2237 }
 0x4ea   : > { %2321 = vadd.xlane.f32.xlu0 %v2320_v36  ;;  %v2256_v58 = vsub.f32 %v5543_v14, %v2238_v39  ;;  %4571 = vpow2.f32 %v2284_v53  ;;  %v2713_v39 = vsel %vm2389_vm4, %v5559_v25, 0 }
 0x4ec   : > { %v5633_v57 = vpop.eup %4567 }
 0x4ed   : > { %v5639_v61 = vpop.permute.xlu0 %1425  ;;  %v2323_v8 = vsel %vm1441_vm3, %v5633_v57, 0.0 }
 0x4f0   : > { %v5637_v0 = vpop.eup %4569 }
 0x4f1   : > { %v2326_v1 = vsel %vm1441_vm3, %v5637_v0, 0.0 }
 0x4f4   : > { %v5643_v62 = vpop.eup %4571 }
 0x4f5   : > { %v2329_v2 = vsel %vm1441_vm3, %v5643_v62, 0.0 }
 0x4f7   : > { %1435 = vrot.lane.b32.xlu1 %v5394_v49, %s4865_s13  ;;  %v2286_v49 = vmul.f32 1.442695, %v2256_v58  ;;  %v2759_v58 = vsel %vm2389_vm4, %v5639_v61, 0 }
 0x4f9   : > { %4573 = vpow2.f32 %v2286_v49 }
 0x500   : > { %1433 = vrot.lane.b32.xlu0 %v5385_v45, %s4865_s13  ;;  %v5631_v45 = vpop.permute.xlu1 %1427 }
 0x503   : > { %v5651_v4 = vpop.eup %4573 }
 0x504   : > { %v5635_v59 = vpop.permute.xlu1 %1429  ;;  %v2332_v9 = vsel %vm1441_vm3, %v5651_v4, 0.0 }
 0x508   : > { %v5645_v14 = vpop.permute.xlu1 %1431 }
 0x51b   : > { %2324 = vadd.xlane.f32.xlu1 %v2323_v8 }
 0x51e   : > { %v2292_v63 = vpop.xlane.xlu0 %2291 }
 0x51f   : > { %4575 = vrcp.f32 %v2292_v63  ;;  %2327 = vadd.xlane.f32.xlu1 %v2326_v1  ;;  %2330 = vadd.xlane.f32.xlu0 %v2329_v2  ;;  %v2805_v63 = vsel %vm2389_vm4, %v5631_v45, 0  ;;  %v2851_v2 = vsel %vm2389_vm4, %v5635_v59, 0 }
 0x522   : > { %v2241_v5 = vpop.xlane.xlu1 %2240  ;;  %v2298_v7 = vpop.xlane.xlu0 %2297 }
 0x523   : > { %v2257_v11 = vsub.f32 %v5570_v35, %v2241_v5  ;;  %4577 = vrcp.f32 %v2298_v7  ;;  %2333 = vadd.xlane.f32.xlu1 %v2332_v9  ;;  %v2897_v7 = vsel %vm2389_vm4, %v5645_v14, 0 }
 0x525   : > { %v2288_v13 = vmul.f32 1.442695, %v2257_v11 }
 0x526   : > { %v2295_v32 = vpop.xlane.xlu1 %2294 }
 0x527   : > { %4579 = vpow2.f32 %v2288_v13 }
 0x528   : > { %4581 = vrcp.f32 %v2295_v32 }
 0x529   : > { %v4576_v3 = vpop.eup %4575 }
 0x52a   : > { %v2354_v10 = vmul.f32 %v4576_v3, %v5567_v50  ;;  %v2301_v17 = vpop.xlane.xlu1 %2300 }
 0x52b   : > { %4583 = vrcp.f32 %v2301_v17 }
 0x52c   : > { %v2370_v16 = vpack.c.bf16 %v2354_v10, %v2354_v10 }
 0x52d   : > { %v4578_v18 = vpop.eup %4577 }
 0x52e   : > { %4304 = vmatmul.mubr.msk.bf16.vlgmr.msra.gmra.mrb[36].mxu1 %vm1441_vm3, %v2370_v16  ;;  %v2356_v35 = vmul.f32 %v4578_v18, %v5574_v51  ;;  %v2575_v51 = vsel %vm2389_vm4, %v5557_v52, 0 }
 0x52f   : > { %4314 = vmatpush3.bf16.msra.mxu1 %v2483_v22  ;;  %4315 = vmatprep.mubr.msk.bf16.mxu1 %vm4862_vm2, %v4861_v6 }
 0x530   : > { %4325 = vmatprep.subr.bf16.mxu1 %v4861_v6  ;;  %v2372_v28 = vpack.c.bf16 %v2356_v35, %v2356_v35 }
 0x531   : > { %v5664_v20 = vpop.eup %4579 }
 0x532   : > { %v4582_v50 = vpop.eup %4581  ;;  %v2335_v33 = vsel %vm1441_vm3, %v5664_v20, 0.0 }
 0x533   : > { %v2355_v21 = vmul.f32 %v4582_v50, %v5580_v54  ;;  %2336 = vadd.xlane.f32.xlu0 %v2335_v33 }
 0x534   : > { %1439 = vrot.lane.b32.xlu1 %v5390_v47, %s4865_s13 }
 0x535   : > { %v2371_v26 = vpack.c.bf16 %v2355_v21, %v2355_v21  ;;  %v4584_v27 = vpop.eup %4583 }
 0x536   : > { %4316 = vmatmul.mubr.msk.bf16.vlgmr.msra.gmra.mrb[40].mxu1 %vm1441_vm3, %v2372_v28  ;;  %v2357_v54 = vmul.f32 %v4584_v27, %v5584_v56 }
 0x537   : > { %4310 = vmatmul.mubr.msk.bf16.vlgmr.msra.gmra.mrb[40].mxu0 %vm1441_vm3, %v2371_v26  ;;  %4326 = vmatpush3.bf16.msra.mxu1 %v2575_v51 }
 0x538   : > { %4320 = vmatpush3.bf16.msra.mxu0 %v2529_v30  ;;  %4321 = vmatprep.mubr.msk.bf16.mxu0 %vm4862_vm2, %v4861_v6  ;;  %v2373_v52 = vpack.c.bf16 %v2357_v54, %v2357_v54 }
 0x539   : > { %4331 = vmatprep.subr.bf16.mxu0 %v4861_v6  ;;  %4327 = vmatprep.mubr.msk.bf16.mxu1 %vm4862_vm2, %v4861_v6 }
 0x53a   : > { %4337 = vmatprep.subr.bf16.mxu1 %v4861_v6 }
 0x53f   : > { %4322 = vmatmul.mubr.msk.bf16.vlgmr.msra.gmra.mrb[44].mxu0 %vm1441_vm3, %v2373_v52 }
 0x540   : > { %4332 = vmatpush3.bf16.msra.mxu0 %v2621_v46  ;;  %4333 = vmatprep.mubr.msk.bf16.mxu0 %vm4862_vm2, %v4861_v6 }
 0x541   : > { %4343 = vmatprep.subr.bf16.mxu0 %v4861_v6 }
 0x549   : > { %1437 = vrot.lane.b32.xlu0 %v5380_v43, %s4865_s13 }
 0x55f   : > { %v2304_v47 = vpop.xlane.xlu0 %2303 }
 0x560   : > { %4585 = vrcp.f32 %v2304_v47 }
 0x563   : > { %v2307_v56 = vpop.xlane.xlu1 %2306 }
 0x564   : > { %4587 = vrcp.f32 %v2307_v56 }
 0x567   : > { %v2310_v36 = vpop.xlane.xlu0 %2309 }
 0x568   : > { %4589 = vrcp.f32 %v2310_v36 }
 0x56a   : > { %v4586_v38 = vpop.eup %4585 }
 0x56b   : > { %v2358_v29 = vmul.f32 %v4586_v38, %v5592_v12  ;;  %v2313_v40 = vpop.xlane.xlu1 %2312 }
 0x56c   : > { %4591 = vrcp.f32 %v2313_v40 }
 0x56d   : > { %v2374_v41 = vpack.c.bf16 %v2358_v29, %v2358_v29 }
 0x56e   : > { %v4588_v42 = vpop.eup %4587 }
 0x56f   : > { %v2359_v48 = vmul.f32 %v4588_v42, %v5597_v15  ;;  %4328 = vmatmul.mubr.msk.bf16.vlgmr.msra.gmra.mrb[44].mxu1 %vm1441_vm3, %v2374_v41  ;;  %v2316_v43 = vpop.xlane.xlu0 %2315 }
 0x570   : > { %4338 = vmatpush3.bf16.msra.mxu1 %v2667_v44  ;;  %4593 = vrcp.f32 %v2316_v43  ;;  %4339 = vmatprep.mubr.msk.bf16.mxu1 %vm4862_vm2, %v4861_v6 }
 0x571   : > { %v2375_v55 = vpack.c.bf16 %v2359_v48, %v2359_v48  ;;  %4349 = vmatprep.subr.bf16.mxu1 %v4861_v6 }
 0x572   : > { %v4590_v12 = vpop.eup %4589 }
 0x573   : > { %v2360_v60 = vmul.f32 %v4590_v12, %v5602_v19  ;;  %4334 = vmatmul.mubr.msk.bf16.vlgmr.msra.gmra.mrb[48].mxu0 %vm1441_vm3, %v2375_v55  ;;  %v2319_v24 = vpop.xlane.xlu1 %2318 }
 0x574   : > { %4344 = vmatpush3.bf16.msra.mxu0 %v2713_v39  ;;  %4595 = vrcp.f32 %v2319_v24  ;;  %4345 = vmatprep.mubr.msk.bf16.mxu0 %vm4862_vm2, %v4861_v6 }
 0x575   : > { %v2376_v15 = vpack.c.bf16 %v2360_v60, %v2360_v60  ;;  %4355 = vmatprep.subr.bf16.mxu0 %v4861_v6 }
 0x576   : > { %v4592_v53 = vpop.eup %4591 }
 0x577   : > { %v2361_v49 = vmul.f32 %v4592_v53, %v5607_v23  ;;  %4340 = vmatmul.mubr.msk.bf16.vlgmr.msra.gmra.mrb[48].mxu1 %vm1441_vm3, %v2376_v15  ;;  %v2322_v25 = vpop.xlane.xlu0 %2321 }
 0x578   : > { %4350 = vmatpush3.bf16.msra.mxu1 %v2759_v58  ;;  %4597 = vrcp.f32 %v2322_v25  ;;  %4351 = vmatprep.mubr.msk.bf16.mxu1 %vm4862_vm2, %v4861_v6 }
 0x579   : > { %v2377_v19 = vpack.c.bf16 %v2361_v49, %v2361_v49  ;;  %4361 = vmatprep.subr.bf16.mxu1 %v4861_v6 }
 0x57a   : > { %v4594_v8 = vpop.eup %4593 }
 0x57b   : > { %v2362_v1 = vmul.f32 %v4594_v8, %v5611_v37  ;;  %4346 = vmatmul.mubr.msk.bf16.vlgmr.msra.gmra.mrb[52].mxu0 %vm1441_vm3, %v2377_v19  ;;  %v1434_v59 = vpop.permute.xlu0 %1433 }
 0x57c   : > { %4356 = vmatpush3.bf16.msra.mxu0 %v2805_v63  ;;  %4357 = vmatprep.mubr.msk.bf16.mxu0 %vm4862_vm2, %v4861_v6  ;;  %v2943_v11 = vsel %vm2389_vm4, %v1434_v59, 0 }
 0x57d   : > { %v2378_v23 = vpack.c.bf16 %v2362_v1, %v2362_v1  ;;  %4367 = vmatprep.subr.bf16.mxu0 %v4861_v6 }
 0x57e   : > { %v4596_v61 = vpop.eup %4595 }
 0x57f   : > { %v2363_v5 = vmul.f32 %v4596_v61, %v5615_v31  ;;  %4352 = vmatmul.mubr.msk.bf16.vlgmr.msra.gmra.mrb[52].mxu1 %vm1441_vm3, %v2378_v23 }
 0x580   : > { %4362 = vmatpush3.bf16.msra.mxu1 %v2851_v2  ;;  %4363 = vmatprep.mubr.msk.bf16.mxu1 %vm4862_vm2, %v4861_v6 }
 0x581   : > { %v2379_v37 = vpack.c.bf16 %v2363_v5, %v2363_v5  ;;  %4373 = vmatprep.subr.bf16.mxu1 %v4861_v6 }
 0x582   : > { %v4598_v45 = vpop.eup %4597 }
 0x583   : > { %v2364_v9 = vmul.f32 %v4598_v45, %v5619_v34  ;;  %4358 = vmatmul.mubr.msk.bf16.vlgmr.msra.gmra.mrb[56].mxu0 %vm1441_vm3, %v2379_v37  ;;  %v1436_v34 = vpop.permute.xlu1 %1435 }
 0x584   : > { %4368 = vmatpush3.bf16.msra.mxu0 %v2897_v7  ;;  %4369 = vmatprep.mubr.msk.bf16.mxu0 %vm4862_vm2, %v4861_v6  ;;  %v2989_v35 = vsel %vm2389_vm4, %v1436_v34, 0 }
 0x585   : > { %v2380_v31 = vpack.c.bf16 %v2364_v9, %v2364_v9  ;;  %4379 = vmatprep.subr.bf16.mxu0 %v4861_v6 }
 0x587   : > { %4364 = vmatmul.mubr.msk.bf16.vlgmr.msra.gmra.mrb[56].mxu1 %vm1441_vm3, %v2380_v31 }
 0x588   : > { %4374 = vmatpush3.bf16.msra.mxu1 %v2943_v11  ;;  %4375 = vmatprep.mubr.msk.bf16.mxu1 %vm4862_vm2, %v4861_v6 }
 0x589   : > { %4385 = vmatprep.subr.bf16.mxu1 %v4861_v6 }
 0x5a8   : > { %v2325_v14 = vpop.xlane.xlu1 %2324 }
 0x5a9   : > { %4599 = vrcp.f32 %v2325_v14 }
 0x5ac   : > { %v2328_v13 = vpop.xlane.xlu1 %2327  ;;  %v2331_v32 = vpop.xlane.xlu0 %2330 }
 0x5ad   : > { %4601 = vrcp.f32 %v2328_v13 }
 0x5ae   : > { %4603 = vrcp.f32 %v2331_v32 }
 0x5b0   : > { %v2334_v10 = vpop.xlane.xlu1 %2333 }
 0x5b1   : > { %4605 = vrcp.f32 %v2334_v10 }
 0x5b3   : > { %v4600_v3 = vpop.eup %4599 }
 0x5b4   : > { %v2365_v17 = vmul.f32 %v4600_v3, %v5633_v57  ;;  %v1440_v57 = vpop.permute.xlu1 %1439 }
 0x5b6   : > { %v2381_v16 = vpack.c.bf16 %v2365_v17, %v2365_v17 }
 0x5b7   : > { %v4602_v18 = vpop.eup %4601 }
 0x5b8   : > { %v4604_v22 = vpop.eup %4603  ;;  %v2366_v50 = vmul.f32 %v4602_v18, %v5637_v0  ;;  %4370 = vmatmul.mubr.msk.bf16.vlgmr.msra.gmra.mrb[60].mxu0 %vm1441_vm3, %v2381_v16  ;;  %v3081_v0 = vsel %vm2389_vm4, %v1440_v57, 0 }
 0x5b9   : > { %4380 = vmatpush3.bf16.msra.mxu0 %v2989_v35  ;;  %4381 = vmatprep.mubr.msk.bf16.mxu0 %vm4862_vm2, %v4861_v6  ;;  %v2367_v33 = vmul.f32 %v4604_v22, %v5643_v62 }
 0x5ba   : > { %v2382_v21 = vpack.c.bf16 %v2366_v50, %v2366_v50  ;;  %4391 = vmatprep.subr.bf16.mxu0 %v4861_v6  ;;  %v4529_v50 = vld [vmem:[%s6018_s25] sm:$0xff]  }
 0x5bb   : > { %v2383_v28 = vpack.c.bf16 %v2367_v33, %v2367_v33  ;;  %v4606_v26 = vpop.eup %4605  ;;  %v4530_v33 = vld [vmem:[%s6019_s27 + $0x8] sm:$0xff]  }
 0x5bc   : > { %4376 = vmatmul.mubr.msk.bf16.vlgmr.msra.gmra.mrb[60].mxu1 %vm1441_vm3, %v2382_v21  ;;  %v2368_v62 = vmul.f32 %v4606_v26, %v5651_v4 }
 0x5bd   : > { %4387 = vmatprep.mubr.msk.bf16.mxu1 %vm4862_vm2, %v4861_v6 }
 0x5be   : > { %v2384_v54 = vpack.c.bf16 %v2368_v62, %v2368_v62 }
 0x5c0   : > { %4382 = vmatmul.mubr.msk.bf16.vlgmr.msra.gmra.mrb[64].mxu0 %vm1441_vm3, %v2383_v28  ;;  %v2337_v27 = vpop.xlane.xlu0 %2336 }
 0x5c1   : > { %4392 = vmatpush3.bf16.msra.mxu0 %v3081_v0  ;;  %4607 = vrcp.f32 %v2337_v27  ;;  %4393 = vmatprep.mubr.msk.bf16.mxu0 %vm4862_vm2, %v4861_v6 }
 0x5c4   : > { %v1438_v51 = vpop.permute.xlu0 %1437 }
 0x5c5   : > { %v3035_v30 = vsel %vm2389_vm4, %v1438_v51, 0 }
 0x5c6   : > { %4386 = vmatpush3.bf16.msra.mxu1 %v3035_v30 }
 0x5c7   : > { %4397 = vmatprep.subr.bf16.mxu1 %v4529_v50 }
 0x5c9   : > { %4388 = vmatmul.mubr.msk.bf16.vlgmr.msra.gmra.mrb[64].mxu1 %vm1441_vm3, %v2384_v54 }
 0x5ca   : > { %4398 = vmatpush3.bf16.msra.mxu1 %v4529_v50 }
 0x5cb   : > { %v4608_v52 = vpop.eup %4607  ;;  %4399 = vmatprep.subr.bf16.mxu1 %v4530_v33 }
 0x5cc   : > { %v2369_v46 = vmul.f32 %v4608_v52, %v5664_v20 }
 0x5ce   : > { %v2385_v47 = vpack.c.bf16 %v2369_v46, %v2369_v46  ;;  %4400 = vmatpush3.bf16.msra.mxu1 %v4530_v33 }
 0x5d0   : > { %4394 = vmatmul.mubr.msk.bf16.vlgmr.msra.gmra.mrb[68].mxu0 %vm1441_vm3, %v2385_v47 }
 0x601   : > { %v5760_v56 = vpop.f32.mrb[36].mxu1 }
 0x602   : > { %v4305_v36 = vpop.f32.mrb[37].mxu1 }
 0x603   : > { %v2430_v38 = vpop.f32.mrb[38].mxu1 }
 0x604   : > { %v4306_v6 = vpop.f32.mrb[39].mxu1 }
 0x609   : > { %v5762_v29 = vpop.f32.mrb[40].mxu1 }
 0x60a   : > { %v5764_v4 = vpop.f32.mrb[40].mxu0  ;;  %v4317_v40 = vpop.f32.mrb[41].mxu1 }
 0x60b   : > { %v4083_v41 = vpack.c.bf16 %v5764_v4, %v5760_v56  ;;  %v4311_v42 = vpop.f32.mrb[41].mxu0  ;;  %v2522_v44 = vpop.f32.mrb[42].mxu1  ;;  %v4035_v56 = vld [vmem:[%s958_s1] ss:$0 sm:$0xff]  ;;  %s6021_s1 = scalar_lea.vmem [#allocation9], %s5198_s21 }
 0x60c   : > { %v2476_v48 = vpop.f32.mrb[42].mxu0  ;;  %v4318_v20 = vpop.f32.mrb[43].mxu1  ;;  %s6022_s23 = smov %s6021_s1 }
 0x60d   : > { %v4312_v43 = vpop.f32.mrb[43].mxu0 }
 0x612   : > { %v5768_v55 = vpop.f32.mrb[44].mxu0 }
 0x613   : > { %v4084_v12 = vpack.c.bf16 %v5768_v55, %v5762_v29  ;;  %v4323_v39 = vpop.f32.mrb[45].mxu0 }
 0x614   : > { %v2568_v60 = vpop.f32.mrb[46].mxu0 }
 0x615   : > { %v4324_v24 = vpop.f32.mrb[47].mxu0 }
 0x642   : > { %v2611_v15 = vpop.f32.mrb[44].mxu1 }
 0x643   : > { %v4329_v53 = vpop.f32.mrb[45].mxu1 }
 0x644   : > { %v2614_v58 = vpop.f32.mrb[46].mxu1 }
 0x645   : > { %v4330_v49 = vpop.f32.mrb[47].mxu1 }
 0x646   : > { %v2657_v25 = vpop.f32.mrb[48].mxu0 }
 0x647   : > { %v4085_v19 = vpack.c.bf16 %v2657_v25, %v2611_v15  ;;  %v4335_v8 = vpop.f32.mrb[49].mxu0 }
 0x648   : > { %v2660_v63 = vpop.f32.mrb[50].mxu0 }
 0x649   : > { %v4336_v1 = vpop.f32.mrb[51].mxu0  ;;  %3159 = vrot.lane.b32.xlu0 %v4085_v19, %s4867_s12 }
 0x64a   : > { %v2703_v23 = vpop.f32.mrb[48].mxu1 }
 0x64b   : > { %v4341_v61 = vpop.f32.mrb[49].mxu1 }
 0x64c   : > { %v2706_v2 = vpop.f32.mrb[50].mxu1 }
 0x64d   : > { %v4342_v5 = vpop.f32.mrb[51].mxu1 }
 0x64e   : > { %v2749_v37 = vpop.f32.mrb[52].mxu0 }
 0x64f   : > { %v4086_v45 = vpack.c.bf16 %v2749_v37, %v2703_v23  ;;  %v4347_v7 = vpop.f32.mrb[53].mxu0 }
 0x650   : > { %v2752_v9 = vpop.f32.mrb[54].mxu0 }
 0x651   : > { %v4348_v59 = vpop.f32.mrb[55].mxu0  ;;  %3161 = vrot.lane.b32.xlu1 %v4086_v45, %s4867_s12  ;;  %v4633_v45 = vld [vmem:[#allocation2] sm:$0xff] }
 0x652   : > { %v2795_v31 = vpop.f32.mrb[52].mxu1  ;;  %v4635_v59 = vld [vmem:[#allocation2 + $0x8] sm:$0xff] }
 0x653   : > { %v4353_v11 = vpop.f32.mrb[53].mxu1 }
 0x654   : > { %v2798_v34 = vpop.f32.mrb[54].mxu1 }
 0x655   : > { %v4354_v14 = vpop.f32.mrb[55].mxu1 }
 0x656   : > { %v2841_v13 = vpop.f32.mrb[56].mxu0  ;;  %v4636_v14 = vld [vmem:[#allocation2 + $0x18] sm:$0xff] }
 0x657   : > { %v4087_v32 = vpack.c.bf16 %v2841_v13, %v2795_v31  ;;  %v4359_v3 = vpop.f32.mrb[57].mxu0 }
 0x658   : > { %v2844_v10 = vpop.f32.mrb[58].mxu0 }
 0x659   : > { %v4360_v17 = vpop.f32.mrb[59].mxu0  ;;  %3173 = vrot.lane.b32.xlu0 %v4087_v32, %s4868_s9 }
 0x65a   : > { %v2887_v16 = vpop.f32.mrb[56].mxu1 }
 0x65b   : > { %v4365_v18 = vpop.f32.mrb[57].mxu1 }
 0x65c   : > { %v2890_v22 = vpop.f32.mrb[58].mxu1 }
 0x65d   : > { %v4366_v35 = vpop.f32.mrb[59].mxu1 }
 0x68b   : > { %v2933_v21 = vpop.f32.mrb[60].mxu0 }
 0x68c   : > { %v4088_v57 = vpack.c.bf16 %v2933_v21, %v2887_v16  ;;  %v4371_v28 = vpop.f32.mrb[61].mxu0 }
 0x68d   : > { %v2936_v26 = vpop.f32.mrb[62].mxu0 }
 0x68e   : > { %v4372_v0 = vpop.f32.mrb[63].mxu0  ;;  %3175 = vrot.lane.b32.xlu1 %v4088_v57, %s4868_s9  ;;  %s6028_s9 = sld [smem:[#allocation38_spill]] (!%p4058_p4) }
 0x68f   : > { %v2979_v27 = vpop.f32.mrb[60].mxu1 }
 0x690   : > { %v4377_v62 = vpop.f32.mrb[61].mxu1 }
 0x691   : > { %v2982_v51 = vpop.f32.mrb[62].mxu1 }
 0x692   : > { %v4378_v30 = vpop.f32.mrb[63].mxu1 }
 0x693   : > { %v3025_v54 = vpop.f32.mrb[64].mxu0 }
 0x694   : > { %v4089_v52 = vpack.c.bf16 %v3025_v54, %v2979_v27  ;;  %v4383_v46 = vpop.f32.mrb[65].mxu0 }
 0x695   : > { %v3028_v47 = vpop.f32.mrb[66].mxu0 }
 0x696   : > { %v4384_v36 = vpop.f32.mrb[67].mxu0  ;;  %3187 = vrot.lane.b32.xlu0 %v4089_v52, %s4869_s14  ;;  %v4531_v47 = vld [vmem:[%s6021_s1] sm:$0xff]  }
 0x697   : > { %4405 = vmatprep.subr.bf16.mxu0 %v4531_v47  ;;  %v4532_v36 = vld [vmem:[%s6022_s23 + $0x8] sm:$0xff]  }
 0x698   : > { %4406 = vmatpush3.bf16.msra.mxu0 %v4531_v47 }
 0x699   : > { %4407 = vmatprep.subr.bf16.mxu0 %v4532_v36 }
 0x69c   : > { %v3071_v38 = vpop.f32.mrb[64].mxu1  ;;  %4408 = vmatpush3.bf16.msra.mxu0 %v4532_v36 }
 0x69d   : > { %v4389_v6 = vpop.f32.mrb[65].mxu1 }
 0x69e   : > { %v3074_v40 = vpop.f32.mrb[66].mxu1 }
 0x69f   : > { %v4390_v42 = vpop.f32.mrb[67].mxu1 }
 0x6a3   : > { %v3117_v44 = vpop.f32.mrb[68].mxu0 }
 0x6a4   : > { %v4090_v48 = vpack.c.bf16 %v3117_v44, %v3071_v38  ;;  %v4395_v20 = vpop.f32.mrb[69].mxu0 }
 0x6a5   : > { %v3120_v43 = vpop.f32.mrb[70].mxu0 }
 0x6a6   : > { %v4396_v39 = vpop.f32.mrb[71].mxu0  ;;  %3189 = vrot.lane.b32.xlu1 %v4090_v48, %s4869_s14 }
 0x6bb   : > { %v3160_v60 = vpop.permute.xlu0 %3159 }
 0x6bc   : > { %v3193_v15 = vsel %vm1441_vm3, %v4083_v41, %v3160_v60 }
 0x6c3   : > { %v3162_v25 = vpop.permute.xlu1 %3161 }
 0x6c4   : > { %v3196_v8 = vsel %vm1441_vm3, %v4084_v12, %v3162_v25  ;;  %v4634_v12 = vld [vmem:[#allocation2 + $0x10] sm:$0xff] }
 0x6cb   : > { %v3174_v24 = vpop.permute.xlu0 %3173 }
 0x6cc   : > { %v3199_v53 = vsel %vm3197_vm6, %v3193_v15, %v3174_v24 }
 0x700   : > { %v3176_v19 = vpop.permute.xlu1 %3175 }
 0x701   : > { %v3201_v63 = vsel %vm3197_vm6, %v3196_v8, %v3176_v19 }
 0x708   : > { %v3188_v58 = vpop.permute.xlu0 %3187 }
 0x709   : > { %v3204_v49 = vsel %vm3202_vm7, %v3199_v53, %v3188_v58  ;;  %v4040_v58 = vld [vmem:[%s961_s10] ss:$0 sm:$0xff] }
 0x70a   : > { %4401 = vmatprep.mubr.msk.bf16.mxu1 %vm997_vm1, %v3204_v49 }
 0x718   : > { %v3190_v1 = vpop.permute.xlu1 %3189 }
 0x719   : > { %v3206_v23 = vsel %vm3202_vm7, %v3201_v63, %v3190_v1  ;;  %v4041_v1 = vld [vmem:[%s964_s3] ss:$0 sm:$0xff] }
 0x71a   : > { %4402 = vmatmul.mubr.msk.bf16.vlgmr.msra.gmra.mrb[68].mxu1 %vm997_vm1, %v3206_v23 }
 0x7ed   : > { %v4403_v4 = vpop.f32.mrb[68].mxu1 }
 0x7ee   : > { %v3268_v41 = vpop.f32.mrb[69].mxu1  ;;  %v3277_v61 = vadd.f32 %v4403_v4, %v4035_v56 }
 0x7ef   : > { %v3269_v2 = vadd.f32 %v4035_v56, %v3268_v41  ;;  %v4404_v5 = vpop.f32.mrb[70].mxu1 }
 0x7f0   : > { %v3271_v37 = vpop.f32.mrb[71].mxu1  ;;  %v5793_v7 = vadd.f32 %v4634_v12, %v3277_v61  ;;  %v3280_v9 = vadd.f32 %v4404_v5, %v4035_v56 }
 0x7f1   : > { %v5791_v29 = vadd.f32 %v4633_v45, %v3269_v2  ;;  %v3272_v55 = vadd.f32 %v4035_v56, %v3271_v37 }
 0x7f2   : > { %v5801_v13 = vadd.f32 %v4636_v14, %v3280_v9  ;;  %v3295_v32 = vsel %vm997_vm1, %v5793_v7, 0.0  ;;  %v4536_v14 = vld [vmem:[%s5270_s15 + $0x18] sm:$0xff]  }
 0x7f3   : > { %v5795_v31 = vadd.f32 %v4635_v59, %v3272_v55  ;;  %v3289_v11 = vsel %vm997_vm1, %v5791_v29, 0.0  ;;  %v4533_v59 = vld [vmem:[%s5270_s15] sm:$0xff]  }
 0x7f4   : > { %3290 = vadd.xlane.f32.xlu0 %v3289_v11  ;;  %v3298_v3 = vsel %vm997_vm1, %v5801_v13, 0.0  ;;  %4413 = vmatprep.subr.bf16.mxu1 %v4533_v59  ;;  %v4534_v11 = vld [vmem:[%s5270_s15 + $0x8] sm:$0xff]  }
 0x7f5   : > { %v3292_v34 = vsel %vm997_vm1, %v5795_v31, 0.0  ;;  %4414 = vmatpush3.bf16.msra.mxu1 %v4533_v59 }
 0x7f6   : > { %3293 = vadd.xlane.f32.xlu1 %v3292_v34  ;;  %4415 = vmatprep.subr.bf16.mxu1 %v4534_v11  ;;  %v4535_v34 = vld [vmem:[%s5270_s15 + $0x10] sm:$0xff]  }
 0x7f8   : > { %3296 = vadd.xlane.f32.xlu0 %v3295_v32  ;;  %v4042_v32 = vld [vmem:[%s967_s8] ss:$0 sm:$0xff] }
 0x7f9   : > { %4416 = vmatpush3.bf16.msra.mxu1 %v4534_v11 }
 0x7fa   : > { %4417 = vmatprep.subr.bf16.mxu1 %v4535_v34 }
 0x7fc   : > { %3299 = vadd.xlane.f32.xlu0 %v3298_v3 }
 0x7fd   : > { %4418 = vmatpush3.bf16.msra.mxu1 %v4535_v34 }
 0x7fe   : > { %4419 = vmatprep.subr.bf16.mxu1 %v4536_v14 }
 0x801   : > { %4420 = vmatpush3.bf16.msra.mxu1 %v4536_v14 }
 0x881   : > { %v3291_v10 = vpop.xlane.xlu0 %3290 }
 0x882   : > { %v3301_v17 = vmul.f32 0.03125, %v3291_v10 }
 0x883   : > { %v3294_v16 = vpop.xlane.xlu1 %3293 }
 0x884   : > { %v3305_v18 = vsub.f32 %v5791_v29, %v3301_v17  ;;  %v3302_v22 = vmul.f32 0.03125, %v3294_v16 }
 0x885   : > { %v3297_v35 = vpop.xlane.xlu0 %3296 }
 0x886   : > { %v3306_v50 = vsub.f32 %v5795_v31, %v3302_v22  ;;  %v3303_v33 = vmul.f32 0.03125, %v3297_v35  ;;  %v3309_v21 = vmul.f32 %v3305_v18, %v3305_v18 }
 0x888   : > { %v3307_v57 = vsub.f32 %v5793_v7, %v3303_v33  ;;  %v3313_v28 = vsel %vm997_vm1, %v3309_v21, 0.0  ;;  %v3310_v26 = vmul.f32 %v3306_v50, %v3306_v50 }
 0x889   : > { %3314 = vadd.xlane.f32.xlu0 %v3313_v28  ;;  %v3300_v0 = vpop.xlane.xlu0 %3299 }
 0x88a   : > { %v3304_v27 = vmul.f32 0.03125, %v3300_v0  ;;  %v3316_v62 = vsel %vm997_vm1, %v3310_v26, 0.0  ;;  %v3311_v51 = vmul.f32 %v3307_v57, %v3307_v57 }
 0x88b   : > { %3317 = vadd.xlane.f32.xlu1 %v3316_v62 }
 0x88c   : > { %v3308_v30 = vsub.f32 %v5801_v13, %v3304_v27  ;;  %v3319_v54 = vsel %vm997_vm1, %v3311_v51, 0.0 }
 0x88d   : > { %3320 = vadd.xlane.f32.xlu0 %v3319_v54 }
 0x88e   : > { %v3312_v52 = vmul.f32 %v3308_v30, %v3308_v30 }
 0x890   : > { %v3322_v46 = vsel %vm997_vm1, %v3312_v52, 0.0 }
 0x891   : > { %3323 = vadd.xlane.f32.xlu1 %v3322_v46 }
 0x916   : > { %v3315_v38 = vpop.xlane.xlu0 %3314 }
 0x917   : > { %v3325_v6 = vmul.f32 0.03125, %v3315_v38 }
 0x918   : > { %v3318_v40 = vpop.xlane.xlu1 %3317 }
 0x919   : > { %v3329_v42 = vadd.f32 1e-05, %v3325_v6  ;;  %v3326_v44 = vmul.f32 0.03125, %v3318_v40 }
 0x91a   : > { %v3321_v48 = vpop.xlane.xlu0 %3320 }
 0x91b   : > { %4609 = vrsqrt.f32 %v3329_v42  ;;  %v3330_v20 = vadd.f32 1e-05, %v3326_v44  ;;  %v3327_v43 = vmul.f32 0.03125, %v3321_v48 }
 0x91d   : > { %4611 = vrsqrt.f32 %v3330_v20  ;;  %v3331_v39 = vadd.f32 1e-05, %v3327_v43 }
 0x91e   : > { %v3324_v60 = vpop.xlane.xlu1 %3323 }
 0x91f   : > { %4613 = vrsqrt.f32 %v3331_v39  ;;  %v3328_v24 = vmul.f32 0.03125, %v3324_v60 }
 0x921   : > { %v3332_v15 = vadd.f32 1e-05, %v3328_v24 }
 0x923   : > { %4615 = vrsqrt.f32 %v3332_v15  ;;  %v4051_v15 = vld [vmem:[%s975_s18] ss:$0 sm:$0xff]  ;;  %s6027_s18 = sld [smem:[#allocation37_spill]] (!%p4058_p4) }
 0x925   : > { %v4610_v53 = vpop.eup %4609 }
 0x926   : > { %v3337_v49 = vmul.f32 %v4610_v53, %v3305_v18 }
 0x927   : > { %v4612_v25 = vpop.eup %4611 }
 0x928   : > { %v3338_v19 = vmul.f32 %v4612_v25, %v3306_v50  ;;  %v3347_v8 = vmul.f32 %v4040_v58, %v3337_v49 }
 0x929   : > { %v4614_v63 = vpop.eup %4613 }
 0x92a   : > { %v3339_v23 = vmul.f32 %v4614_v63, %v3307_v57  ;;  %v3348_v56 = vmul.f32 %v4040_v58, %v3338_v19  ;;  %v3357_v4 = vadd.f32 %v4041_v1, %v3347_v8 }
 0x92c   : > { %v3358_v41 = vadd.f32 %v4041_v1, %v3348_v56  ;;  %v3349_v2 = vmul.f32 %v4040_v58, %v3339_v23 }
 0x92d   : > { %v4616_v61 = vpop.eup %4615 }
 0x92e   : > { %v3340_v5 = vmul.f32 %v4616_v61, %v3308_v30  ;;  %v3361_v37 = vpack.c.bf16 %v3358_v41, %v3357_v4  ;;  %v3359_v55 = vadd.f32 %v4041_v1, %v3349_v2 }
 0x930   : > { %v3350_v45 = vmul.f32 %v4040_v58, %v3340_v5  ;;  %4409 = vmatprep.mubr.msk.bf16.mxu0 %vm997_vm1, %v3361_v37 }
 0x932   : > { %v3360_v12 = vadd.f32 %v4041_v1, %v3350_v45 }
 0x934   : > { %v3362_v9 = vpack.c.bf16 %v3360_v12, %v3359_v55 }
 0x936   : > { %4410 = vmatmul.mubr.msk.bf16.vlgmr.msra.gmra.mrb[72].mxu0 %vm997_vm1, %v3362_v9 }
 0xa09   : > { %v4411_v3 = vpop.f32.mrb[72].mxu0 }
 0xa0a   : > { %v3435_v10 = vadd.f32 %v4411_v3, %v4042_v32  ;;  %v3426_v17 = vpop.f32.mrb[73].mxu0 }
 0xa0b   : > { %v3427_v16 = vadd.f32 %v4042_v32, %v3426_v17  ;;  %v4412_v18 = vpop.f32.mrb[74].mxu0 }
 0xa0c   : > { %v4049_v22 = vmul.f32 -1.702, %v3435_v10  ;;  %v3438_v35 = vadd.f32 %v4412_v18, %v4042_v32  ;;  %v3429_v50 = vpop.f32.mrb[75].mxu0 }
 0xa0d   : > { %v4047_v33 = vmul.f32 -1.702, %v3427_v16  ;;  %v3430_v21 = vadd.f32 %v4042_v32, %v3429_v50 }
 0xa0e   : > { %v3453_v57 = vmul.f32 1.442695, %v4049_v22  ;;  %v4050_v28 = vmul.f32 -1.702, %v3438_v35 }
 0xa0f   : > { %v3449_v26 = vmul.f32 1.442695, %v4047_v33  ;;  %v4048_v0 = vmul.f32 -1.702, %v3430_v21 }
 0xa10   : > { %4617 = vpow2.f32 %v3453_v57  ;;  %v3455_v27 = vmul.f32 1.442695, %v4050_v28 }
 0xa11   : > { %4619 = vpow2.f32 %v3449_v26  ;;  %v3451_v62 = vmul.f32 1.442695, %v4048_v0 }
 0xa12   : > { %4621 = vpow2.f32 %v3455_v27 }
 0xa13   : > { %4623 = vpow2.f32 %v3451_v62 }
 0xa1a   : > { %v4618_v51 = vpop.eup %4617 }
 0xa1b   : > { %v4620_v30 = vpop.eup %4619  ;;  %v3459_v54 = vadd.f32 1.0, %v4618_v51 }
 0xa1c   : > { %v4622_v52 = vpop.eup %4621  ;;  %v3457_v46 = vadd.f32 1.0, %v4620_v30 }
 0xa1d   : > { %v4624_v47 = vpop.eup %4623  ;;  %4625 = vrcp.f32 %v3459_v54  ;;  %v3460_v36 = vadd.f32 1.0, %v4622_v52 }
 0xa1e   : > { %4627 = vrcp.f32 %v3457_v46  ;;  %v3458_v38 = vadd.f32 1.0, %v4624_v47  ;;  %v4059_v46 = vld [vmem:[%s6027_s18] ss:$0 sm:$0xff] (!%p4058_p4) }
 0xa1f   : > { %4629 = vrcp.f32 %v3460_v36  ;;  %v4060_v36 = vld [vmem:[%s6028_s9] ss:$0 sm:$0xff] (!%p4058_p4) }
 0xa20   : > { %4631 = vrcp.f32 %v3458_v38 }
 0xa27   : > { %v4626_v6 = vpop.eup %4625 }
 0xa28   : > { %v4628_v40 = vpop.eup %4627  ;;  %v3471_v48 = vmul.f32 %v4626_v6, %v3435_v10 }
 0xa29   : > { %v4630_v42 = vpop.eup %4629  ;;  %v3469_v43 = vmul.f32 %v4628_v40, %v3427_v16 }
 0xa2a   : > { %v4632_v44 = vpop.eup %4631  ;;  %v3472_v20 = vmul.f32 %v4630_v42, %v3438_v35 }
 0xa2b   : > { %v3470_v39 = vmul.f32 %v4632_v44, %v3430_v21 }
 0xa2c   : > { %v3474_v60 = vpack.c.bf16 %v3472_v20, %v3471_v48 }
 0xa2d   : > { %v3473_v24 = vpack.c.bf16 %v3470_v39, %v3469_v43 }
 0xa2f   : > { %4421 = vmatprep.mubr.msk.bf16.mxu1 %vm3514_vm8, %v3473_v24 }
 0xa30   : > { %4422 = vmatmul.mubr.msk.bf16.vlgmr.msra.gmra.mrb[72].mxu1 %vm3514_vm8, %v3474_v60 }
 0xb03   : > { %v4423_v53 = vpop.f32.mrb[72].mxu1 }
 0xb04   : > { %v3564_v58 = vadd.f32 %v4423_v53, %v4051_v15  ;;  %v3555_v49 = vpop.f32.mrb[73].mxu1 }
 0xb05   : > { %v3556_v25 = vadd.f32 %v4051_v15, %v3555_v49  ;;  %v4424_v19 = vpop.f32.mrb[74].mxu1  ;;  %3581 = sbr.rel (%p4058_p4) target bundleno = 3149 (0xc4d), region = 124 }
 0xb06   : > { %v3572_v8 = vadd.f32 %v3564_v58, %v5793_v7  ;;  %v3567_v63 = vadd.f32 %v4424_v19, %v4051_v15  ;;  %v3558_v1 = vpop.f32.mrb[75].mxu1 }
 0xb07   : > { %v3570_v23 = vadd.f32 %v3556_v25, %v5791_v29  ;;  %v3559_v56 = vadd.f32 %v4051_v15, %v3558_v1 }
 0xb08   : > { %3576 = vst.msk [vmem:[#allocation2 + $0x10] sm:$0xff] %vm997_vm1, %v3572_v8  ;;  %v3573_v4 = vadd.f32 %v3567_v63, %v5801_v13  ;;  %v3590_v29 = vsel (!%p4058_p4), %vm997_vm1, %v3572_v8, 0.0 }
 0xb09   : > { %3574 = vst.msk [vmem:[#allocation2] sm:$0xff] %vm997_vm1, %v3570_v23  ;;  %v3571_v41 = vadd.f32 %v3559_v56, %v5795_v31  ;;  %v3584_v7 = vsel (!%p4058_p4), %vm997_vm1, %v3570_v23, 0.0  ;;  %3591 = vadd.xlane.f32.xlu1 (!%p4058_p4), %v3590_v29 }
 0xb0a   : > { %3577 = vst.msk [vmem:[#allocation2 + $0x18] sm:$0xff] %vm997_vm1, %v3573_v4  ;;  %3585 = vadd.xlane.f32.xlu0 (!%p4058_p4), %v3584_v7  ;;  %v3593_v13 = vsel (!%p4058_p4), %vm997_vm1, %v3573_v4, 0.0 }
 0xb0b   : > { %3575 = vst.msk [vmem:[#allocation2 + $0x8] sm:$0xff] %vm997_vm1, %v3571_v41  ;;  %v3587_v61 = vsel (!%p4058_p4), %vm997_vm1, %v3571_v41, 0.0 }
 0xb0d   : > { %3594 = vadd.xlane.f32.xlu1 %v3593_v13 }
 0xb0e   : > { %3588 = vadd.xlane.f32.xlu0 %v3587_v61 }
 0xb96   : > { %v3592_v2 = vpop.xlane.xlu1 %3591 }
 0xb97   : > { %v3586_v31 = vpop.xlane.xlu0 %3585  ;;  %v3598_v37 = vmul.f32 0.03125, %v3592_v2 }
 0xb98   : > { %v3596_v5 = vmul.f32 0.03125, %v3586_v31 }
 0xb99   : > { %v3602_v55 = vsub.f32 %v3572_v8, %v3598_v37 }
 0xb9a   : > { %v3600_v45 = vsub.f32 %v3570_v23, %v3596_v5  ;;  %v3595_v9 = vpop.xlane.xlu1 %3594 }
 0xb9b   : > { %v3589_v12 = vpop.xlane.xlu0 %3588  ;;  %v3599_v11 = vmul.f32 0.03125, %v3595_v9  ;;  %v3606_v14 = vmul.f32 %v3602_v55, %v3602_v55 }
 0xb9c   : > { %v3597_v59 = vmul.f32 0.03125, %v3589_v12  ;;  %v3604_v34 = vmul.f32 %v3600_v45, %v3600_v45 }
 0xb9d   : > { %v3603_v3 = vsub.f32 %v3573_v4, %v3599_v11  ;;  %v3614_v17 = vsel %vm997_vm1, %v3606_v14, 0.0 }
 0xb9e   : > { %v3601_v32 = vsub.f32 %v3571_v41, %v3597_v59  ;;  %v3608_v10 = vsel %vm997_vm1, %v3604_v34, 0.0 }
 0xb9f   : > { %3609 = vadd.xlane.f32.xlu0 %v3608_v10  ;;  %v3607_v18 = vmul.f32 %v3603_v3, %v3603_v3 }
 0xba0   : > { %v3605_v16 = vmul.f32 %v3601_v32, %v3601_v32 }
 0xba1   : > { %v3617_v35 = vsel %vm997_vm1, %v3607_v18, 0.0 }
 0xba2   : > { %v3611_v22 = vsel %vm997_vm1, %v3605_v16, 0.0 }
 0xba3   : > { %3615 = vadd.xlane.f32.xlu0 %v3614_v17  ;;  %3612 = vadd.xlane.f32.xlu1 %v3611_v22 }
 0xba7   : > { %3618 = vadd.xlane.f32.xlu1 %v3617_v35 }
 0xc2c   : > { %v3610_v50 = vpop.xlane.xlu0 %3609 }
 0xc2d   : > { %v3620_v33 = vmul.f32 0.03125, %v3610_v50 }
 0xc2f   : > { %v3624_v21 = vadd.f32 1e-05, %v3620_v33 }
 0xc30   : > { %v3613_v57 = vpop.xlane.xlu1 %3612  ;;  %v3616_v28 = vpop.xlane.xlu0 %3615 }
 0xc31   : > { %4637 = vrsqrt.f32 %v3624_v21  ;;  %v3621_v26 = vmul.f32 0.03125, %v3613_v57  ;;  %v3622_v0 = vmul.f32 0.03125, %v3616_v28 }
 0xc33   : > { %v3625_v27 = vadd.f32 1e-05, %v3621_v26  ;;  %v3626_v62 = vadd.f32 1e-05, %v3622_v0 }
 0xc34   : > { %v3619_v51 = vpop.xlane.xlu1 %3618 }
 0xc35   : > { %4639 = vrsqrt.f32 %v3625_v27  ;;  %v3623_v30 = vmul.f32 0.03125, %v3619_v51 }
 0xc36   : > { %4641 = vrsqrt.f32 %v3626_v62 }
 0xc37   : > { %v3627_v54 = vadd.f32 1e-05, %v3623_v30 }
 0xc39   : > { %4643 = vrsqrt.f32 %v3627_v54 }
 0xc3b   : > { %v4638_v52 = vpop.eup %4637 }
 0xc3c   : > { %v3632_v47 = vmul.f32 %v4638_v52, %v3600_v45 }
 0xc3e   : > { %v3642_v38 = vmul.f32 %v4059_v46, %v3632_v47 }
 0xc3f   : > { %v4640_v6 = vpop.eup %4639 }
 0xc40   : > { %v4642_v40 = vpop.eup %4641  ;;  %v3652_v42 = vadd.f32 %v4060_v36, %v3642_v38  ;;  %v3633_v44 = vmul.f32 %v4640_v6, %v3601_v32 }
 0xc41   : > { %v3634_v48 = vmul.f32 %v4642_v40, %v3602_v55 }
 0xc42   : > { %v3656_v20 = vpack.c.bf16 %v3652_v42, %v3652_v42  ;;  %v3643_v43 = vmul.f32 %v4059_v46, %v3633_v44 }
 0xc43   : > { %v4644_v39 = vpop.eup %4643  ;;  %v3644_v60 = vmul.f32 %v4059_v46, %v3634_v48 }
 0xc44   : > { %3661 = vst.msk [vmem:[#allocation11] sm:$0xf] %vm3660_vm9, %v3656_v20  ;;  %v3653_v24 = vadd.f32 %v4060_v36, %v3643_v43  ;;  %v3635_v15 = vmul.f32 %v4644_v39, %v3603_v3 }
 0xc45   : > { %v3654_v53 = vadd.f32 %v4060_v36, %v3644_v60 }
 0xc46   : > { %v3657_v58 = vpack.c.bf16 %v3653_v24, %v3653_v24  ;;  %v3645_v49 = vmul.f32 %v4059_v46, %v3635_v15 }
 0xc47   : > { %v3658_v25 = vpack.c.bf16 %v3654_v53, %v3654_v53 }
 0xc48   : > { %3662 = vst.msk [vmem:[#allocation11 + $0x4] sm:$0xf] %vm3660_vm9, %v3657_v58  ;;  %v3655_v19 = vadd.f32 %v4060_v36, %v3645_v49 }
 0xc49   : > { %3663 = vst.msk [vmem:[#allocation11 + $0x8] sm:$0xf] %vm3660_vm9, %v3658_v25 }
 0xc4a   : > { %v3659_v8 = vpack.c.bf16 %v3655_v19, %v3655_v19 }
 0xc4c   : > { %3664 = vst.msk [vmem:[#allocation11 + $0xc] sm:$0xf] %vm3660_vm9, %v3659_v8 }
 0xc4d PF: > { %p4456_p7 = scmp.eq.s32.totalorder %s5077_s26, 1  ;;  %s4870_s25 = smov [#allocation11]  }
 0xc4e   : > { %s3674_s27 = sshll.u32 %s4870_s25, 4  ;;  %s3675_s27 = int_to_ptr.vmem [resolvable:$true] %s3674_s27 }
 0xc4f   : > { %s4763_s14 = scalar_lea.vmem %s3675_s27, 256  ;;  %p4770_p13 = scmp.lt.s32.totalorder %s3675_s27, %s3675_s27 }
 0xc50   : > { %p4764_p11 = scmp.ne.s32.totalorder %s3675_s27, %s4763_s14  ;;  %p4771_p12 = scmp.lt.s32.totalorder %s4763_s14, %s4763_s14 }
 0xc52   : > { %p4765_p6 = pnand %p4764_p11, %p4456_p7  ;;  %p4772_p10 = por %p4771_p12, %p4770_p13 }
 0xc54   : > { %p4766_p8 = pneg %p4765_p6 }
 0xc56   : > { %p4773_p9 = pnand %p4772_p10, %p4766_p8 }
 0xc58   : > { %4776 = shalt.err (!%p4773_p9)
}
 0xc59   : > { %s6029_s2 = sld [smem:[#allocation39_spill]] }
 0xc5f   : > { %s6030_s21 = smov %s6029_s2  ;;  %s4777_s1 = scalar_lea.hbm %s6029_s2, 256 }
 0xc60   : > { %p4778_p3 = scmp.ne.s32.totalorder %s6030_s21, %s4777_s1  ;;  %p4783_p0 = scmp.lt.u32.totalorder %s4777_s1, %s6030_s21 }
 0xc62   : > { %p4779_p5 = pnand %p4778_p3, %p4456_p7 }
 0xc64   : > { %p4780_p2 = pneg %p4779_p5 }
 0xc66   : > { %p4785_p1 = pnand %p4783_p0, %p4780_p2 }
 0xc68   : > { %4788 = shalt.err (!%p4785_p1)
}
 0xc69   : > { %s4871_s13 = smov 64   ;;  %s4872_s11 = smov 4  }
 0xc6a   : > { %4436 = dma.vmem_to_hbm [thread:$0]  (%p4456_p7), %s3675_s27, 256, %s6030_s21, [#allocation5], %s4871_s13, %s4871_s13, %s4872_s11  }
 0xc6b   : > { %4826 = dma.done.wait (%p4456_p7), [#allocation5], 256  }
 0xc6c   : > { %4828 = vsyncadd (%p4456_p7), [#allocation5], 4294967040 }
 0xc6d PF: > { %s6031_s0 = sld [smem:[#allocation18_spill]]  ;;  %s6032_s8 = sld [smem:[#allocation16_spill]] }
 0xc6e   : > { %s6033_s23 = sld [smem:[#allocation20_spill]]  ;;  %s6034_s24 = sld [smem:[#allocation17_spill]] }
 0xc6f   : > { %s6035_s2 = sld [smem:[#allocation19_spill]]  ;;  %s6036_s1 = smov %s4835_s22 }
 0xc73   : > { %s38_s25 = sadd.s32 1, %s6031_s0   ;;  %s6037_s22 = smov %s6032_s8 }
 0xc74   : > { %p35_p4 = scmp.ge.s32.totalorder %s38_s25, 4  }
 0xc76   :  { %37 = sbr.rel (!%p35_p4) target bundleno = 28 (0x1c), region = 218 }
 0xc7d   :  { %3690 = vsyncpa [#allocation4], 1 }
 0xc7e   :  { %3692 = vsyncpa [#allocation4 + $0x1], 1 }
 0xc7f   :  { %3693 = vsyncpa [#allocation7], 1 }
 0xc80   :  { %3695 = vsyncpa [#allocation7 + $0x1], 1 }
 0xc81   :  { %3696 = vsyncpa [#allocation10], 1 }
 0xc82   :  { %3698 = vsyncpa [#allocation10 + $0x1], 1 }
 0xc83   :  { %3699 = vsyncpa [#allocation5], 1 }
 0xc84   :  { %3701 = vsyncpa [#allocation5 + $0x1], 1 }

</bundles_post_ra>
